<compile_context>
chip_gen: v6e
topology: v6e:2x2x1
jax: 0.10.0
libtpu: 0.0.40
codegen_flags: <defaults>
</compile_context>

<pallas_src>
import jax
import jax.numpy as jnp
from jax import lax
from jax.experimental import pallas as pl
from jax.experimental.pallas import tpu as pltpu


def _gelu_exact(x):
    # PyTorch F.gelu default = exact erf formulation
    return 0.5 * x * (1.0 + lax.erf(x * 0.7071067811865476))


# --------------------------------------------------------------------------
# Spectral (complex) channel mixing kernel.  Single grid step, batch folded
# into the block; lane axis = fused mode axis S = num_vars*2*modes1*modes2.
#   out[b, o, s] = sum_i x[b, i, s] * w[i, o, s]     (plain complex product)
# Weight packed as w[0]=Re, w[1]=Im; output packed as out[0]=Re, out[1]=Im.
# --------------------------------------------------------------------------
def spectral_mul_kernel(xr_ref, xi_ref, w_ref, o_ref):
    B, Cin, S = xr_ref.shape
    Cout = w_ref.shape[2]
    for b in range(B):                      # static unroll (B small)
        xr_b = xr_ref[b]                    # (Cin, S)  ~1 vreg
        xi_b = xi_ref[b]
        acc_r = jnp.zeros((Cout, S), jnp.float32)
        acc_i = jnp.zeros((Cout, S), jnp.float32)
        for i in range(Cin):                # static unroll over input channels
            wr_i = w_ref[0, i]              # (Cout, S) loaded per channel (low vreg pressure)
            wi_i = w_ref[1, i]
            xr_i = xr_b[i][None, :]         # (1, S) sublane-broadcast against (Cout, S)
            xi_i = xi_b[i][None, :]
            acc_r = acc_r + xr_i * wr_i - xi_i * wi_i
            acc_i = acc_i + xr_i * wi_i + xi_i * wr_i
        o_ref[0, b, :, :] = acc_r
        o_ref[1, b, :, :] = acc_i


def spectral_mul(xr, xi, w):
    # xr/xi: (B, Cin, S) f32 ; w: (2, Cin, Cout, S) f32
    B, Cin, S = xr.shape
    Cout = w.shape[2]
    # Single invocation (no grid): the whole problem is a few KiB, so one step
    # minimizes the fixed per-step / per-DMA-descriptor overhead that dominates.
    return pl.pallas_call(
        spectral_mul_kernel,
        out_shape=jax.ShapeDtypeStruct((2, B, Cout, S), jnp.float32),
    )(xr, xi, w)


# --------------------------------------------------------------------------
# Pointwise kernel: gelu(MLP(x1) + w(x) + b(grid)), channels on sublanes,
# flattened spatial axis N = num_vars*H*W on lanes (lane-dense stores).
# Weight slab w_ref = [wm1, wm2, ww, wb_padded] (4,C,C);
# bias  slab b_ref = [bm1, bm2, bw+bb]          (3,C,1).
# --------------------------------------------------------------------------
def pointwise_kernel(x1_ref, x_ref, g_ref, w_ref, b_ref, o_ref):
    x1 = x1_ref[...]                                    # (C, N)
    # MLP branch: Conv3d(C->C,1) -> gelu -> Conv3d(C->C,1)
    h = jnp.dot(w_ref[0], x1, preferred_element_type=jnp.float32) + b_ref[0]
    h = _gelu_exact(h)
    y1 = jnp.dot(w_ref[1], h, preferred_element_type=jnp.float32) + b_ref[1]
    # w branch: Conv3d(C->C,1) on x; contraction K=C stays one sublane tile
    y2 = jnp.dot(w_ref[2], x_ref[...], preferred_element_type=jnp.float32)
    # b branch: Conv3d(2->C,1) on grid -> two VPU MACs (avoid a K=2 matmul)
    g = g_ref[...]                                      # (2, N)
    wb = w_ref[3]                                       # (C, C); only cols 0:2 used
    y3 = wb[:, 0:1] * g[0:1, :] + wb[:, 1:2] * g[1:2, :]
    # b_ref[2] = bias(w-branch) + bias(b-branch)
    o_ref[...] = _gelu_exact(y1 + y2 + y3 + b_ref[2])


def pointwise_mix(x1, x, g, w, b):
    # x1/x: (B, C, N); g: (B, 2, N); N is a multiple of 128 here (768)
    B, C, N = x1.shape
    act = lambda c: pl.BlockSpec((None, c, N), lambda bb: (bb, 0, 0))
    cst = lambda shape: pl.BlockSpec(shape, lambda bb: (0,) * len(shape))
    return pl.pallas_call(
        pointwise_kernel,
        out_shape=jax.ShapeDtypeStruct((B, C, N), jnp.float32),
        grid=(B,),
        in_specs=[act(C), act(C), act(2), cst(w.shape), cst(b.shape)],
        out_specs=act(C),
        compiler_params=pltpu.CompilerParams(dimension_semantics=("parallel",)),
    )(x1, x, g, w, b)


# --------------------------------------------------------------------------
# FNO2d forward
# --------------------------------------------------------------------------
def fno2d_forward(x, grid, params, modes1, modes2):
    B, C, V, H, W = x.shape
    Wh = W // 2 + 1

    # ---- SpectralConv2d ----
    # TODO(synk): rfft2/irfft2 have no Pallas equivalent; the FFTs stay in plain JAX.
    x_ft = jnp.fft.rfft2(x, axes=(-2, -1))              # (B, C, V, H, Wh) complex64
    # fuse the low- and high-frequency blocks into a single Pallas call
    x_sel = jnp.concatenate(
        [x_ft[:, :, :, :modes1, :modes2],
         x_ft[:, :, :, H - modes1:, :modes2]], axis=3)   # (B, C, V, 2*m1, m2)
    S = V * 2 * modes1 * modes2
    xr = jnp.real(x_sel).reshape(B, C, S).astype(jnp.float32)
    xi = jnp.imag(x_sel).reshape(B, C, S).astype(jnp.float32)
    out_ri = spectral_mul(xr, xi, params["spec_w"])      # (2, B, C, S)
    out_sel = (out_ri[0] + 1j * out_ri[1]).astype(jnp.complex64)
    out_sel = out_sel.reshape(B, C, V, 2 * modes1, modes2)
    out_ft = jnp.zeros((B, C, V, H, Wh), jnp.complex64)
    out_ft = out_ft.at[:, :, :, :modes1, :modes2].set(out_sel[:, :, :, :modes1, :])
    out_ft = out_ft.at[:, :, :, H - modes1:, :modes2].set(out_sel[:, :, :, modes1:, :])
    x1 = jnp.fft.irfft2(out_ft, s=(H, W), axes=(-2, -1)).astype(jnp.float32)

    # ---- MLP(x1) + w(x) + b(grid) + GELU (Pallas, lane-dense, no transposes) ----
    N = V * H * W
    out = pointwise_mix(x1.reshape(B, C, N),
                        x.reshape(B, C, N),
                        grid.reshape(B, grid.shape[1], N),
                        params["pw_w"], params["pw_b"])  # (B, C, N)
    return out.reshape(B, C, V, H, W)


# --------------------------------------------------------------------------
# Deterministic parameter initialization (synthetic; matches module shapes)
# --------------------------------------------------------------------------
def init_params(key, width, num_vars, modes1, modes2):
    ks = jax.random.split(key, 10)
    scale = 1.0 / width

    def crand(k, shape):
        kr, ki = jax.random.split(k)
        return (scale * jax.random.uniform(kr, shape, jnp.float32)
                + 1j * scale * jax.random.uniform(ki, shape, jnp.float32)
                ).astype(jnp.complex64)

    def conv_w(k, cin, cout):
        bound = 1.0 / (cin ** 0.5)
        # stored as (Cout, Cin): kernel computes y = W @ x (channels on sublanes)
        return jax.random.uniform(k, (cout, cin), jnp.float32, -bound, bound)

    def conv_b(k, cin, cout):
        bound = 1.0 / (cin ** 0.5)
        return jax.random.uniform(k, (cout, 1), jnp.float32, -bound, bound)

    # spectral weights: concat low/high along modes1, flatten to S (no 128-pad),
    # pack Re/Im into one (2, Cin, Cout, S) tensor (single DMA descriptor)
    wshape = (width, width, num_vars, modes1, modes2)
    w1 = crand(ks[0], wshape)
    w2 = crand(ks[1], wshape)
    w_cat = jnp.concatenate([w1, w2], axis=3)            # (Cin, Cout, V, 2*m1, m2)
    S = num_vars * 2 * modes1 * modes2
    spec_w = jnp.stack([jnp.real(w_cat), jnp.imag(w_cat)]
                       ).reshape(2, width, width, S).astype(jnp.float32)

    kb = jax.random.split(ks[9], 8)
    wm1 = conv_w(ks[2], width, width); bm1 = conv_b(kb[0], width, width)
    wm2 = conv_w(ks[3], width, width); bm2 = conv_b(kb[1], width, width)
    ww = conv_w(ks[4], width, width);  bw = conv_b(kb[2], width, width)
    wb = conv_w(ks[5], 2, width);      bb = conv_b(kb[3], 2, width)

    # pack pointwise weights/biases into two slabs (fewer tiny DMA descriptors)
    wb_pad = jnp.pad(wb, ((0, 0), (0, width - 2)))       # (C, C), only cols 0:2 real
    pw_w = jnp.stack([wm1, wm2, ww, wb_pad])             # (4, C, C)
    pw_b = jnp.stack([bm1, bm2, bw + bb])                # (3, C, 1)

    return dict(spec_w=spec_w, pw_w=pw_w, pw_b=pw_b)


if __name__ == "__main__":
    B, width, num_vars, H, Wdim = 2, 8, 3, 16, 16
    modes1 = modes2 = 4

    key = jax.random.PRNGKey(0)
    kx, kg, kp = jax.random.split(key, 3)
    x = jax.random.normal(kx, (B, width, num_vars, H, Wdim), jnp.float32)
    grid = jax.random.normal(kg, (B, 2, num_vars, H, Wdim), jnp.float32)
    params = init_params(kp, width, num_vars, modes1, modes2)

    fwd = jax.jit(lambda x, g, p: fno2d_forward(x, g, p, modes1, modes2))
    out = fwd(x, grid, params)
    jax.block_until_ready(out)
    assert out.shape == (B, width, num_vars, H, Wdim)
    assert out.dtype == jnp.float32
    assert bool(jnp.all(jnp.isfinite(out)))
    print("KERNEL_OK")
</pallas_src>

<mosaic_0001>
module attributes {stable_mosaic.version = 11 : i64} {
  func.func @spectral_mul_kernel(%arg0: memref<2x8x96xf32, #tpu.memory_space<vmem>>, %arg1: memref<2x8x96xf32, #tpu.memory_space<vmem>>, %arg2: memref<2x8x8x96xf32, #tpu.memory_space<vmem>>, %arg3: memref<2x2x8x96xf32, #tpu.memory_space<vmem>>) attributes {dimension_semantics = [], scalar_prefetch = 0 : i64, scratch_operands = 0 : i64, tpu.core_type = #tpu.core_type<tc>} {
    %c0 = arith.constant 0 : index
    %c0_0 = arith.constant 0 : index
    %c0_1 = arith.constant 0 : index
    %0 = vector.load %arg0[%c0, %c0_0, %c0_1] : memref<2x8x96xf32, #tpu.memory_space<vmem>>, vector<1x8x96xf32>
    %1 = vector.shape_cast %0 : vector<1x8x96xf32> to vector<8x96xf32>
    %c0_2 = arith.constant 0 : index
    %c0_3 = arith.constant 0 : index
    %c0_4 = arith.constant 0 : index
    %2 = vector.load %arg1[%c0_2, %c0_3, %c0_4] : memref<2x8x96xf32, #tpu.memory_space<vmem>>, vector<1x8x96xf32>
    %3 = vector.shape_cast %2 : vector<1x8x96xf32> to vector<8x96xf32>
    %cst = arith.constant 0.000000e+00 : f32
    %4 = vector.broadcast %cst : f32 to vector<8x96xf32>
    %cst_5 = arith.constant 0.000000e+00 : f32
    %5 = vector.broadcast %cst_5 : f32 to vector<8x96xf32>
    %c0_6 = arith.constant 0 : index
    %c0_7 = arith.constant 0 : index
    %c0_8 = arith.constant 0 : index
    %c0_9 = arith.constant 0 : index
    %6 = vector.load %arg2[%c0_6, %c0_7, %c0_8, %c0_9] : memref<2x8x8x96xf32, #tpu.memory_space<vmem>>, vector<1x1x8x96xf32>
    %7 = vector.shape_cast %6 : vector<1x1x8x96xf32> to vector<8x96xf32>
    %c1 = arith.constant 1 : index
    %c0_10 = arith.constant 0 : index
    %c0_11 = arith.constant 0 : index
    %c0_12 = arith.constant 0 : index
    %8 = vector.load %arg2[%c1, %c0_10, %c0_11, %c0_12] : memref<2x8x8x96xf32, #tpu.memory_space<vmem>>, vector<1x1x8x96xf32>
    %9 = vector.shape_cast %8 : vector<1x1x8x96xf32> to vector<8x96xf32>
    %10 = vector.extract_strided_slice %1 {offsets = [0, 0], sizes = [1, 96], strides = [1, 1]} : vector<8x96xf32> to vector<1x96xf32>
    %11 = vector.shape_cast %10 : vector<1x96xf32> to vector<96xf32>
    %12 = vector.shape_cast %11 : vector<96xf32> to vector<1x96xf32>
    %13 = vector.extract_strided_slice %3 {offsets = [0, 0], sizes = [1, 96], strides = [1, 1]} : vector<8x96xf32> to vector<1x96xf32>
    %14 = vector.shape_cast %13 : vector<1x96xf32> to vector<96xf32>
    %15 = vector.shape_cast %14 : vector<96xf32> to vector<1x96xf32>
    %16 = vector.broadcast %12 : vector<1x96xf32> to vector<8x96xf32>
    %17 = arith.mulf %16, %7 : vector<8x96xf32>
    %18 = arith.addf %4, %17 : vector<8x96xf32>
    %19 = vector.broadcast %15 : vector<1x96xf32> to vector<8x96xf32>
    %20 = arith.mulf %19, %9 : vector<8x96xf32>
    %21 = arith.subf %18, %20 : vector<8x96xf32>
    %22 = vector.broadcast %12 : vector<1x96xf32> to vector<8x96xf32>
    %23 = arith.mulf %22, %9 : vector<8x96xf32>
    %24 = arith.addf %5, %23 : vector<8x96xf32>
    %25 = vector.broadcast %15 : vector<1x96xf32> to vector<8x96xf32>
    %26 = arith.mulf %25, %7 : vector<8x96xf32>
    %27 = arith.addf %24, %26 : vector<8x96xf32>
    %c0_13 = arith.constant 0 : index
    %c1_14 = arith.constant 1 : index
    %c0_15 = arith.constant 0 : index
    %c0_16 = arith.constant 0 : index
    %28 = vector.load %arg2[%c0_13, %c1_14, %c0_15, %c0_16] : memref<2x8x8x96xf32, #tpu.memory_space<vmem>>, vector<1x1x8x96xf32>
    %29 = vector.shape_cast %28 : vector<1x1x8x96xf32> to vector<8x96xf32>
    %c1_17 = arith.constant 1 : index
    %c1_18 = arith.constant 1 : index
    %c0_19 = arith.constant 0 : index
    %c0_20 = arith.constant 0 : index
    %30 = vector.load %arg2[%c1_17, %c1_18, %c0_19, %c0_20] : memref<2x8x8x96xf32, #tpu.memory_space<vmem>>, vector<1x1x8x96xf32>
    %31 = vector.shape_cast %30 : vector<1x1x8x96xf32> to vector<8x96xf32>
    %32 = vector.extract_strided_slice %1 {offsets = [1, 0], sizes = [1, 96], strides = [1, 1]} : vector<8x96xf32> to vector<1x96xf32>
    %33 = vector.shape_cast %32 : vector<1x96xf32> to vector<96xf32>
    %34 = vector.shape_cast %33 : vector<96xf32> to vector<1x96xf32>
    %35 = vector.extract_strided_slice %3 {offsets = [1, 0], sizes = [1, 96], strides = [1, 1]} : vector<8x96xf32> to vector<1x96xf32>
    %36 = vector.shape_cast %35 : vector<1x96xf32> to vector<96xf32>
    %37 = vector.shape_cast %36 : vector<96xf32> to vector<1x96xf32>
    %38 = vector.broadcast %34 : vector<1x96xf32> to vector<8x96xf32>
    %39 = arith.mulf %38, %29 : vector<8x96xf32>
    %40 = arith.addf %21, %39 : vector<8x96xf32>
    %41 = vector.broadcast %37 : vector<1x96xf32> to vector<8x96xf32>
    %42 = arith.mulf %41, %31 : vector<8x96xf32>
    %43 = arith.subf %40, %42 : vector<8x96xf32>
    %44 = vector.broadcast %34 : vector<1x96xf32> to vector<8x96xf32>
    %45 = arith.mulf %44, %31 : vector<8x96xf32>
    %46 = arith.addf %27, %45 : vector<8x96xf32>
    %47 = vector.broadcast %37 : vector<1x96xf32> to vector<8x96xf32>
    %48 = arith.mulf %47, %29 : vector<8x96xf32>
    %49 = arith.addf %46, %48 : vector<8x96xf32>
    %c0_21 = arith.constant 0 : index
    %c2 = arith.constant 2 : index
    %c0_22 = arith.constant 0 : index
    %c0_23 = arith.constant 0 : index
    %50 = vector.load %arg2[%c0_21, %c2, %c0_22, %c0_23] : memref<2x8x8x96xf32, #tpu.memory_space<vmem>>, vector<1x1x8x96xf32>
    %51 = vector.shape_cast %50 : vector<1x1x8x96xf32> to vector<8x96xf32>
    %c1_24 = arith.constant 1 : index
    %c2_25 = arith.constant 2 : index
    %c0_26 = arith.constant 0 : index
    %c0_27 = arith.constant 0 : index
    %52 = vector.load %arg2[%c1_24, %c2_25, %c0_26, %c0_27] : memref<2x8x8x96xf32, #tpu.memory_space<vmem>>, vector<1x1x8x96xf32>
    %53 = vector.shape_cast %52 : vector<1x1x8x96xf32> to vector<8x96xf32>
    %54 = vector.extract_strided_slice %1 {offsets = [2, 0], sizes = [1, 96], strides = [1, 1]} : vector<8x96xf32> to vector<1x96xf32>
    %55 = vector.shape_cast %54 : vector<1x96xf32> to vector<96xf32>
    %56 = vector.shape_cast %55 : vector<96xf32> to vector<1x96xf32>
    %57 = vector.extract_strided_slice %3 {offsets = [2, 0], sizes = [1, 96], strides = [1, 1]} : vector<8x96xf32> to vector<1x96xf32>
    %58 = vector.shape_cast %57 : vector<1x96xf32> to vector<96xf32>
    %59 = vector.shape_cast %58 : vector<96xf32> to vector<1x96xf32>
    %60 = vector.broadcast %56 : vector<1x96xf32> to vector<8x96xf32>
    %61 = arith.mulf %60, %51 : vector<8x96xf32>
    %62 = arith.addf %43, %61 : vector<8x96xf32>
    %63 = vector.broadcast %59 : vector<1x96xf32> to vector<8x96xf32>
    %64 = arith.mulf %63, %53 : vector<8x96xf32>
    %65 = arith.subf %62, %64 : vector<8x96xf32>
    %66 = vector.broadcast %56 : vector<1x96xf32> to vector<8x96xf32>
    %67 = arith.mulf %66, %53 : vector<8x96xf32>
    %68 = arith.addf %49, %67 : vector<8x96xf32>
    %69 = vector.broadcast %59 : vector<1x96xf32> to vector<8x96xf32>
    %70 = arith.mulf %69, %51 : vector<8x96xf32>
    %71 = arith.addf %68, %70 : vector<8x96xf32>
    %c0_28 = arith.constant 0 : index
    %c3 = arith.constant 3 : index
    %c0_29 = arith.constant 0 : index
    %c0_30 = arith.constant 0 : index
    %72 = vector.load %arg2[%c0_28, %c3, %c0_29, %c0_30] : memref<2x8x8x96xf32, #tpu.memory_space<vmem>>, vector<1x1x8x96xf32>
    %73 = vector.shape_cast %72 : vector<1x1x8x96xf32> to vector<8x96xf32>
    %c1_31 = arith.constant 1 : index
    %c3_32 = arith.constant 3 : index
    %c0_33 = arith.constant 0 : index
    %c0_34 = arith.constant 0 : index
    %74 = vector.load %arg2[%c1_31, %c3_32, %c0_33, %c0_34] : memref<2x8x8x96xf32, #tpu.memory_space<vmem>>, vector<1x1x8x96xf32>
    %75 = vector.shape_cast %74 : vector<1x1x8x96xf32> to vector<8x96xf32>
    %76 = vector.extract_strided_slice %1 {offsets = [3, 0], sizes = [1, 96], strides = [1, 1]} : vector<8x96xf32> to vector<1x96xf32>
    %77 = vector.shape_cast %76 : vector<1x96xf32> to vector<96xf32>
    %78 = vector.shape_cast %77 : vector<96xf32> to vector<1x96xf32>
    %79 = vector.extract_strided_slice %3 {offsets = [3, 0], sizes = [1, 96], strides = [1, 1]} : vector<8x96xf32> to vector<1x96xf32>
    %80 = vector.shape_cast %79 : vector<1x96xf32> to vector<96xf32>
    %81 = vector.shape_cast %80 : vector<96xf32> to vector<1x96xf32>
    %82 = vector.broadcast %78 : vector<1x96xf32> to vector<8x96xf32>
    %83 = arith.mulf %82, %73 : vector<8x96xf32>
    %84 = arith.addf %65, %83 : vector<8x96xf32>
    %85 = vector.broadcast %81 : vector<1x96xf32> to vector<8x96xf32>
    %86 = arith.mulf %85, %75 : vector<8x96xf32>
    %87 = arith.subf %84, %86 : vector<8x96xf32>
    %88 = vector.broadcast %78 : vector<1x96xf32> to vector<8x96xf32>
    %89 = arith.mulf %88, %75 : vector<8x96xf32>
    %90 = arith.addf %71, %89 : vector<8x96xf32>
    %91 = vector.broadcast %81 : vector<1x96xf32> to vector<8x96xf32>
    %92 = arith.mulf %91, %73 : vector<8x96xf32>
    %93 = arith.addf %90, %92 : vector<8x96xf32>
    %c0_35 = arith.constant 0 : index
    %c4 = arith.constant 4 : index
    %c0_36 = arith.constant 0 : index
    %c0_37 = arith.constant 0 : index
    %94 = vector.load %arg2[%c0_35, %c4, %c0_36, %c0_37] : memref<2x8x8x96xf32, #tpu.memory_space<vmem>>, vector<1x1x8x96xf32>
    %95 = vector.shape_cast %94 : vector<1x1x8x96xf32> to vector<8x96xf32>
    %c1_38 = arith.constant 1 : index
    %c4_39 = arith.constant 4 : index
    %c0_40 = arith.constant 0 : index
    %c0_41 = arith.constant 0 : index
    %96 = vector.load %arg2[%c1_38, %c4_39, %c0_40, %c0_41] : memref<2x8x8x96xf32, #tpu.memory_space<vmem>>, vector<1x1x8x96xf32>
    %97 = vector.shape_cast %96 : vector<1x1x8x96xf32> to vector<8x96xf32>
    %98 = vector.extract_strided_slice %1 {offsets = [4, 0], sizes = [1, 96], strides = [1, 1]} : vector<8x96xf32> to vector<1x96xf32>
    %99 = vector.shape_cast %98 : vector<1x96xf32> to vector<96xf32>
    %100 = vector.shape_cast %99 : vector<96xf32> to vector<1x96xf32>
    %101 = vector.extract_strided_slice %3 {offsets = [4, 0], sizes = [1, 96], strides = [1, 1]} : vector<8x96xf32> to vector<1x96xf32>
    %102 = vector.shape_cast %101 : vector<1x96xf32> to vector<96xf32>
    %103 = vector.shape_cast %102 : vector<96xf32> to vector<1x96xf32>
    %104 = vector.broadcast %100 : vector<1x96xf32> to vector<8x96xf32>
    %105 = arith.mulf %104, %95 : vector<8x96xf32>
    %106 = arith.addf %87, %105 : vector<8x96xf32>
    %107 = vector.broadcast %103 : vector<1x96xf32> to vector<8x96xf32>
    %108 = arith.mulf %107, %97 : vector<8x96xf32>
    %109 = arith.subf %106, %108 : vector<8x96xf32>
    %110 = vector.broadcast %100 : vector<1x96xf32> to vector<8x96xf32>
    %111 = arith.mulf %110, %97 : vector<8x96xf32>
    %112 = arith.addf %93, %111 : vector<8x96xf32>
    %113 = vector.broadcast %103 : vector<1x96xf32> to vector<8x96xf32>
    %114 = arith.mulf %113, %95 : vector<8x96xf32>
    %115 = arith.addf %112, %114 : vector<8x96xf32>
    %c0_42 = arith.constant 0 : index
    %c5 = arith.constant 5 : index
    %c0_43 = arith.constant 0 : index
    %c0_44 = arith.constant 0 : index
    %116 = vector.load %arg2[%c0_42, %c5, %c0_43, %c0_44] : memref<2x8x8x96xf32, #tpu.memory_space<vmem>>, vector<1x1x8x96xf32>
    %117 = vector.shape_cast %116 : vector<1x1x8x96xf32> to vector<8x96xf32>
    %c1_45 = arith.constant 1 : index
    %c5_46 = arith.constant 5 : index
    %c0_47 = arith.constant 0 : index
    %c0_48 = arith.constant 0 : index
    %118 = vector.load %arg2[%c1_45, %c5_46, %c0_47, %c0_48] : memref<2x8x8x96xf32, #tpu.memory_space<vmem>>, vector<1x1x8x96xf32>
    %119 = vector.shape_cast %118 : vector<1x1x8x96xf32> to vector<8x96xf32>
    %120 = vector.extract_strided_slice %1 {offsets = [5, 0], sizes = [1, 96], strides = [1, 1]} : vector<8x96xf32> to vector<1x96xf32>
    %121 = vector.shape_cast %120 : vector<1x96xf32> to vector<96xf32>
    %122 = vector.shape_cast %121 : vector<96xf32> to vector<1x96xf32>
    %123 = vector.extract_strided_slice %3 {offsets = [5, 0], sizes = [1, 96], strides = [1, 1]} : vector<8x96xf32> to vector<1x96xf32>
    %124 = vector.shape_cast %123 : vector<1x96xf32> to vector<96xf32>
    %125 = vector.shape_cast %124 : vector<96xf32> to vector<1x96xf32>
    %126 = vector.broadcast %122 : vector<1x96xf32> to vector<8x96xf32>
    %127 = arith.mulf %126, %117 : vector<8x96xf32>
    %128 = arith.addf %109, %127 : vector<8x96xf32>
    %129 = vector.broadcast %125 : vector<1x96xf32> to vector<8x96xf32>
    %130 = arith.mulf %129, %119 : vector<8x96xf32>
    %131 = arith.subf %128, %130 : vector<8x96xf32>
    %132 = vector.broadcast %122 : vector<1x96xf32> to vector<8x96xf32>
    %133 = arith.mulf %132, %119 : vector<8x96xf32>
    %134 = arith.addf %115, %133 : vector<8x96xf32>
    %135 = vector.broadcast %125 : vector<1x96xf32> to vector<8x96xf32>
    %136 = arith.mulf %135, %117 : vector<8x96xf32>
    %137 = arith.addf %134, %136 : vector<8x96xf32>
    %c0_49 = arith.constant 0 : index
    %c6 = arith.constant 6 : index
    %c0_50 = arith.constant 0 : index
    %c0_51 = arith.constant 0 : index
    %138 = vector.load %arg2[%c0_49, %c6, %c0_50, %c0_51] : memref<2x8x8x96xf32, #tpu.memory_space<vmem>>, vector<1x1x8x96xf32>
    %139 = vector.shape_cast %138 : vector<1x1x8x96xf32> to vector<8x96xf32>
    %c1_52 = arith.constant 1 : index
    %c6_53 = arith.constant 6 : index
    %c0_54 = arith.constant 0 : index
    %c0_55 = arith.constant 0 : index
    %140 = vector.load %arg2[%c1_52, %c6_53, %c0_54, %c0_55] : memref<2x8x8x96xf32, #tpu.memory_space<vmem>>, vector<1x1x8x96xf32>
    %141 = vector.shape_cast %140 : vector<1x1x8x96xf32> to vector<8x96xf32>
    %142 = vector.extract_strided_slice %1 {offsets = [6, 0], sizes = [1, 96], strides = [1, 1]} : vector<8x96xf32> to vector<1x96xf32>
    %143 = vector.shape_cast %142 : vector<1x96xf32> to vector<96xf32>
    %144 = vector.shape_cast %143 : vector<96xf32> to vector<1x96xf32>
    %145 = vector.extract_strided_slice %3 {offsets = [6, 0], sizes = [1, 96], strides = [1, 1]} : vector<8x96xf32> to vector<1x96xf32>
    %146 = vector.shape_cast %145 : vector<1x96xf32> to vector<96xf32>
    %147 = vector.shape_cast %146 : vector<96xf32> to vector<1x96xf32>
    %148 = vector.broadcast %144 : vector<1x96xf32> to vector<8x96xf32>
    %149 = arith.mulf %148, %139 : vector<8x96xf32>
    %150 = arith.addf %131, %149 : vector<8x96xf32>
    %151 = vector.broadcast %147 : vector<1x96xf32> to vector<8x96xf32>
    %152 = arith.mulf %151, %141 : vector<8x96xf32>
    %153 = arith.subf %150, %152 : vector<8x96xf32>
    %154 = vector.broadcast %144 : vector<1x96xf32> to vector<8x96xf32>
    %155 = arith.mulf %154, %141 : vector<8x96xf32>
    %156 = arith.addf %137, %155 : vector<8x96xf32>
    %157 = vector.broadcast %147 : vector<1x96xf32> to vector<8x96xf32>
    %158 = arith.mulf %157, %139 : vector<8x96xf32>
    %159 = arith.addf %156, %158 : vector<8x96xf32>
    %c0_56 = arith.constant 0 : index
    %c7 = arith.constant 7 : index
    %c0_57 = arith.constant 0 : index
    %c0_58 = arith.constant 0 : index
    %160 = vector.load %arg2[%c0_56, %c7, %c0_57, %c0_58] : memref<2x8x8x96xf32, #tpu.memory_space<vmem>>, vector<1x1x8x96xf32>
    %161 = vector.shape_cast %160 : vector<1x1x8x96xf32> to vector<8x96xf32>
    %c1_59 = arith.constant 1 : index
    %c7_60 = arith.constant 7 : index
    %c0_61 = arith.constant 0 : index
    %c0_62 = arith.constant 0 : index
    %162 = vector.load %arg2[%c1_59, %c7_60, %c0_61, %c0_62] : memref<2x8x8x96xf32, #tpu.memory_space<vmem>>, vector<1x1x8x96xf32>
    %163 = vector.shape_cast %162 : vector<1x1x8x96xf32> to vector<8x96xf32>
    %164 = vector.extract_strided_slice %1 {offsets = [7, 0], sizes = [1, 96], strides = [1, 1]} : vector<8x96xf32> to vector<1x96xf32>
    %165 = vector.shape_cast %164 : vector<1x96xf32> to vector<96xf32>
    %166 = vector.shape_cast %165 : vector<96xf32> to vector<1x96xf32>
    %167 = vector.extract_strided_slice %3 {offsets = [7, 0], sizes = [1, 96], strides = [1, 1]} : vector<8x96xf32> to vector<1x96xf32>
    %168 = vector.shape_cast %167 : vector<1x96xf32> to vector<96xf32>
    %169 = vector.shape_cast %168 : vector<96xf32> to vector<1x96xf32>
    %170 = vector.broadcast %166 : vector<1x96xf32> to vector<8x96xf32>
    %171 = arith.mulf %170, %161 : vector<8x96xf32>
    %172 = arith.addf %153, %171 : vector<8x96xf32>
    %173 = vector.broadcast %169 : vector<1x96xf32> to vector<8x96xf32>
    %174 = arith.mulf %173, %163 : vector<8x96xf32>
    %175 = arith.subf %172, %174 : vector<8x96xf32>
    %176 = vector.broadcast %166 : vector<1x96xf32> to vector<8x96xf32>
    %177 = arith.mulf %176, %163 : vector<8x96xf32>
    %178 = arith.addf %159, %177 : vector<8x96xf32>
    %179 = vector.broadcast %169 : vector<1x96xf32> to vector<8x96xf32>
    %180 = arith.mulf %179, %161 : vector<8x96xf32>
    %181 = arith.addf %178, %180 : vector<8x96xf32>
    %c0_63 = arith.constant 0 : index
    %c0_64 = arith.constant 0 : index
    %c0_65 = arith.constant 0 : index
    %c0_66 = arith.constant 0 : index
    %182 = vector.load %arg3[%c0_63, %c0_64, %c0_65, %c0_66] : memref<2x2x8x96xf32, #tpu.memory_space<vmem>>, vector<1x1x8x96xf32>
    %183 = vector.shape_cast %182 : vector<1x1x8x96xf32> to vector<8x96xf32>
    %184 = vector.shape_cast %175 : vector<8x96xf32> to vector<1x1x8x96xf32>
    tpu.vector_store %arg3[%c0_63, %c0_64, %c0_65, %c0_66], %184 {strides = array<i32>} : memref<2x2x8x96xf32, #tpu.memory_space<vmem>>, vector<1x1x8x96xf32>,
    %c1_67 = arith.constant 1 : index
    %c0_68 = arith.constant 0 : index
    %c0_69 = arith.constant 0 : index
    %c0_70 = arith.constant 0 : index
    %185 = vector.load %arg3[%c1_67, %c0_68, %c0_69, %c0_70] : memref<2x2x8x96xf32, #tpu.memory_space<vmem>>, vector<1x1x8x96xf32>
    %186 = vector.shape_cast %185 : vector<1x1x8x96xf32> to vector<8x96xf32>
    %187 = vector.shape_cast %181 : vector<8x96xf32> to vector<1x1x8x96xf32>
    tpu.vector_store %arg3[%c1_67, %c0_68, %c0_69, %c0_70], %187 {strides = array<i32>} : memref<2x2x8x96xf32, #tpu.memory_space<vmem>>, vector<1x1x8x96xf32>,
    %c1_71 = arith.constant 1 : index
    %c0_72 = arith.constant 0 : index
    %c0_73 = arith.constant 0 : index
    %188 = vector.load %arg0[%c1_71, %c0_72, %c0_73] : memref<2x8x96xf32, #tpu.memory_space<vmem>>, vector<1x8x96xf32>
    %189 = vector.shape_cast %188 : vector<1x8x96xf32> to vector<8x96xf32>
    %c1_74 = arith.constant 1 : index
    %c0_75 = arith.constant 0 : index
    %c0_76 = arith.constant 0 : index
    %190 = vector.load %arg1[%c1_74, %c0_75, %c0_76] : memref<2x8x96xf32, #tpu.memory_space<vmem>>, vector<1x8x96xf32>
    %191 = vector.shape_cast %190 : vector<1x8x96xf32> to vector<8x96xf32>
    %cst_77 = arith.constant 0.000000e+00 : f32
    %192 = vector.broadcast %cst_77 : f32 to vector<8x96xf32>
    %cst_78 = arith.constant 0.000000e+00 : f32
    %193 = vector.broadcast %cst_78 : f32 to vector<8x96xf32>
    %c0_79 = arith.constant 0 : index
    %c0_80 = arith.constant 0 : index
    %c0_81 = arith.constant 0 : index
    %c0_82 = arith.constant 0 : index
    %194 = vector.load %arg2[%c0_79, %c0_80, %c0_81, %c0_82] : memref<2x8x8x96xf32, #tpu.memory_space<vmem>>, vector<1x1x8x96xf32>
    %195 = vector.shape_cast %194 : vector<1x1x8x96xf32> to vector<8x96xf32>
    %c1_83 = arith.constant 1 : index
    %c0_84 = arith.constant 0 : index
    %c0_85 = arith.constant 0 : index
    %c0_86 = arith.constant 0 : index
    %196 = vector.load %arg2[%c1_83, %c0_84, %c0_85, %c0_86] : memref<2x8x8x96xf32, #tpu.memory_space<vmem>>, vector<1x1x8x96xf32>
    %197 = vector.shape_cast %196 : vector<1x1x8x96xf32> to vector<8x96xf32>
    %198 = vector.extract_strided_slice %189 {offsets = [0, 0], sizes = [1, 96], strides = [1, 1]} : vector<8x96xf32> to vector<1x96xf32>
    %199 = vector.shape_cast %198 : vector<1x96xf32> to vector<96xf32>
    %200 = vector.shape_cast %199 : vector<96xf32> to vector<1x96xf32>
    %201 = vector.extract_strided_slice %191 {offsets = [0, 0], sizes = [1, 96], strides = [1, 1]} : vector<8x96xf32> to vector<1x96xf32>
    %202 = vector.shape_cast %201 : vector<1x96xf32> to vector<96xf32>
    %203 = vector.shape_cast %202 : vector<96xf32> to vector<1x96xf32>
    %204 = vector.broadcast %200 : vector<1x96xf32> to vector<8x96xf32>
    %205 = arith.mulf %204, %195 : vector<8x96xf32>
    %206 = arith.addf %192, %205 : vector<8x96xf32>
    %207 = vector.broadcast %203 : vector<1x96xf32> to vector<8x96xf32>
    %208 = arith.mulf %207, %197 : vector<8x96xf32>
    %209 = arith.subf %206, %208 : vector<8x96xf32>
    %210 = vector.broadcast %200 : vector<1x96xf32> to vector<8x96xf32>
    %211 = arith.mulf %210, %197 : vector<8x96xf32>
    %212 = arith.addf %193, %211 : vector<8x96xf32>
    %213 = vector.broadcast %203 : vector<1x96xf32> to vector<8x96xf32>
    %214 = arith.mulf %213, %195 : vector<8x96xf32>
    %215 = arith.addf %212, %214 : vector<8x96xf32>
    %c0_87 = arith.constant 0 : index
    %c1_88 = arith.constant 1 : index
    %c0_89 = arith.constant 0 : index
    %c0_90 = arith.constant 0 : index
    %216 = vector.load %arg2[%c0_87, %c1_88, %c0_89, %c0_90] : memref<2x8x8x96xf32, #tpu.memory_space<vmem>>, vector<1x1x8x96xf32>
    %217 = vector.shape_cast %216 : vector<1x1x8x96xf32> to vector<8x96xf32>
    %c1_91 = arith.constant 1 : index
    %c1_92 = arith.constant 1 : index
    %c0_93 = arith.constant 0 : index
    %c0_94 = arith.constant 0 : index
    %218 = vector.load %arg2[%c1_91, %c1_92, %c0_93, %c0_94] : memref<2x8x8x96xf32, #tpu.memory_space<vmem>>, vector<1x1x8x96xf32>
    %219 = vector.shape_cast %218 : vector<1x1x8x96xf32> to vector<8x96xf32>
    %220 = vector.extract_strided_slice %189 {offsets = [1, 0], sizes = [1, 96], strides = [1, 1]} : vector<8x96xf32> to vector<1x96xf32>
    %221 = vector.shape_cast %220 : vector<1x96xf32> to vector<96xf32>
    %222 = vector.shape_cast %221 : vector<96xf32> to vector<1x96xf32>
    %223 = vector.extract_strided_slice %191 {offsets = [1, 0], sizes = [1, 96], strides = [1, 1]} : vector<8x96xf32> to vector<1x96xf32>
    %224 = vector.shape_cast %223 : vector<1x96xf32> to vector<96xf32>
    %225 = vector.shape_cast %224 : vector<96xf32> to vector<1x96xf32>
    %226 = vector.broadcast %222 : vector<1x96xf32> to vector<8x96xf32>
    %227 = arith.mulf %226, %217 : vector<8x96xf32>
    %228 = arith.addf %209, %227 : vector<8x96xf32>
    %229 = vector.broadcast %225 : vector<1x96xf32> to vector<8x96xf32>
    %230 = arith.mulf %229, %219 : vector<8x96xf32>
    %231 = arith.subf %228, %230 : vector<8x96xf32>
    %232 = vector.broadcast %222 : vector<1x96xf32> to vector<8x96xf32>
    %233 = arith.mulf %232, %219 : vector<8x96xf32>
    %234 = arith.addf %215, %233 : vector<8x96xf32>
    %235 = vector.broadcast %225 : vector<1x96xf32> to vector<8x96xf32>
    %236 = arith.mulf %235, %217 : vector<8x96xf32>
    %237 = arith.addf %234, %236 : vector<8x96xf32>
    %c0_95 = arith.constant 0 : index
    %c2_96 = arith.constant 2 : index
    %c0_97 = arith.constant 0 : index
    %c0_98 = arith.constant 0 : index
    %238 = vector.load %arg2[%c0_95, %c2_96, %c0_97, %c0_98] : memref<2x8x8x96xf32, #tpu.memory_space<vmem>>, vector<1x1x8x96xf32>
    %239 = vector.shape_cast %238 : vector<1x1x8x96xf32> to vector<8x96xf32>
    %c1_99 = arith.constant 1 : index
    %c2_100 = arith.constant 2 : index
    %c0_101 = arith.constant 0 : index
    %c0_102 = arith.constant 0 : index
    %240 = vector.load %arg2[%c1_99, %c2_100, %c0_101, %c0_102] : memref<2x8x8x96xf32, #tpu.memory_space<vmem>>, vector<1x1x8x96xf32>
    %241 = vector.shape_cast %240 : vector<1x1x8x96xf32> to vector<8x96xf32>
    %242 = vector.extract_strided_slice %189 {offsets = [2, 0], sizes = [1, 96], strides = [1, 1]} : vector<8x96xf32> to vector<1x96xf32>
    %243 = vector.shape_cast %242 : vector<1x96xf32> to vector<96xf32>
    %244 = vector.shape_cast %243 : vector<96xf32> to vector<1x96xf32>
    %245 = vector.extract_strided_slice %191 {offsets = [2, 0], sizes = [1, 96], strides = [1, 1]} : vector<8x96xf32> to vector<1x96xf32>
    %246 = vector.shape_cast %245 : vector<1x96xf32> to vector<96xf32>
    %247 = vector.shape_cast %246 : vector<96xf32> to vector<1x96xf32>
    %248 = vector.broadcast %244 : vector<1x96xf32> to vector<8x96xf32>
    %249 = arith.mulf %248, %239 : vector<8x96xf32>
    %250 = arith.addf %231, %249 : vector<8x96xf32>
    %251 = vector.broadcast %247 : vector<1x96xf32> to vector<8x96xf32>
    %252 = arith.mulf %251, %241 : vector<8x96xf32>
    %253 = arith.subf %250, %252 : vector<8x96xf32>
    %254 = vector.broadcast %244 : vector<1x96xf32> to vector<8x96xf32>
    %255 = arith.mulf %254, %241 : vector<8x96xf32>
    %256 = arith.addf %237, %255 : vector<8x96xf32>
    %257 = vector.broadcast %247 : vector<1x96xf32> to vector<8x96xf32>
    %258 = arith.mulf %257, %239 : vector<8x96xf32>
    %259 = arith.addf %256, %258 : vector<8x96xf32>
    %c0_103 = arith.constant 0 : index
    %c3_104 = arith.constant 3 : index
    %c0_105 = arith.constant 0 : index
    %c0_106 = arith.constant 0 : index
    %260 = vector.load %arg2[%c0_103, %c3_104, %c0_105, %c0_106] : memref<2x8x8x96xf32, #tpu.memory_space<vmem>>, vector<1x1x8x96xf32>
    %261 = vector.shape_cast %260 : vector<1x1x8x96xf32> to vector<8x96xf32>
    %c1_107 = arith.constant 1 : index
    %c3_108 = arith.constant 3 : index
    %c0_109 = arith.constant 0 : index
    %c0_110 = arith.constant 0 : index
    %262 = vector.load %arg2[%c1_107, %c3_108, %c0_109, %c0_110] : memref<2x8x8x96xf32, #tpu.memory_space<vmem>>, vector<1x1x8x96xf32>
    %263 = vector.shape_cast %262 : vector<1x1x8x96xf32> to vector<8x96xf32>
    %264 = vector.extract_strided_slice %189 {offsets = [3, 0], sizes = [1, 96], strides = [1, 1]} : vector<8x96xf32> to vector<1x96xf32>
    %265 = vector.shape_cast %264 : vector<1x96xf32> to vector<96xf32>
    %266 = vector.shape_cast %265 : vector<96xf32> to vector<1x96xf32>
    %267 = vector.extract_strided_slice %191 {offsets = [3, 0], sizes = [1, 96], strides = [1, 1]} : vector<8x96xf32> to vector<1x96xf32>
    %268 = vector.shape_cast %267 : vector<1x96xf32> to vector<96xf32>
    %269 = vector.shape_cast %268 : vector<96xf32> to vector<1x96xf32>
    %270 = vector.broadcast %266 : vector<1x96xf32> to vector<8x96xf32>
    %271 = arith.mulf %270, %261 : vector<8x96xf32>
    %272 = arith.addf %253, %271 : vector<8x96xf32>
    %273 = vector.broadcast %269 : vector<1x96xf32> to vector<8x96xf32>
    %274 = arith.mulf %273, %263 : vector<8x96xf32>
    %275 = arith.subf %272, %274 : vector<8x96xf32>
    %276 = vector.broadcast %266 : vector<1x96xf32> to vector<8x96xf32>
    %277 = arith.mulf %276, %263 : vector<8x96xf32>
    %278 = arith.addf %259, %277 : vector<8x96xf32>
    %279 = vector.broadcast %269 : vector<1x96xf32> to vector<8x96xf32>
    %280 = arith.mulf %279, %261 : vector<8x96xf32>
    %281 = arith.addf %278, %280 : vector<8x96xf32>
    %c0_111 = arith.constant 0 : index
    %c4_112 = arith.constant 4 : index
    %c0_113 = arith.constant 0 : index
    %c0_114 = arith.constant 0 : index
    %282 = vector.load %arg2[%c0_111, %c4_112, %c0_113, %c0_114] : memref<2x8x8x96xf32, #tpu.memory_space<vmem>>, vector<1x1x8x96xf32>
    %283 = vector.shape_cast %282 : vector<1x1x8x96xf32> to vector<8x96xf32>
    %c1_115 = arith.constant 1 : index
    %c4_116 = arith.constant 4 : index
    %c0_117 = arith.constant 0 : index
    %c0_118 = arith.constant 0 : index
    %284 = vector.load %arg2[%c1_115, %c4_116, %c0_117, %c0_118] : memref<2x8x8x96xf32, #tpu.memory_space<vmem>>, vector<1x1x8x96xf32>
    %285 = vector.shape_cast %284 : vector<1x1x8x96xf32> to vector<8x96xf32>
    %286 = vector.extract_strided_slice %189 {offsets = [4, 0], sizes = [1, 96], strides = [1, 1]} : vector<8x96xf32> to vector<1x96xf32>
    %287 = vector.shape_cast %286 : vector<1x96xf32> to vector<96xf32>
    %288 = vector.shape_cast %287 : vector<96xf32> to vector<1x96xf32>
    %289 = vector.extract_strided_slice %191 {offsets = [4, 0], sizes = [1, 96], strides = [1, 1]} : vector<8x96xf32> to vector<1x96xf32>
    %290 = vector.shape_cast %289 : vector<1x96xf32> to vector<96xf32>
    %291 = vector.shape_cast %290 : vector<96xf32> to vector<1x96xf32>
    %292 = vector.broadcast %288 : vector<1x96xf32> to vector<8x96xf32>
    %293 = arith.mulf %292, %283 : vector<8x96xf32>
    %294 = arith.addf %275, %293 : vector<8x96xf32>
    %295 = vector.broadcast %291 : vector<1x96xf32> to vector<8x96xf32>
    %296 = arith.mulf %295, %285 : vector<8x96xf32>
    %297 = arith.subf %294, %296 : vector<8x96xf32>
    %298 = vector.broadcast %288 : vector<1x96xf32> to vector<8x96xf32>
    %299 = arith.mulf %298, %285 : vector<8x96xf32>
    %300 = arith.addf %281, %299 : vector<8x96xf32>
    %301 = vector.broadcast %291 : vector<1x96xf32> to vector<8x96xf32>
    %302 = arith.mulf %301, %283 : vector<8x96xf32>
    %303 = arith.addf %300, %302 : vector<8x96xf32>
    %c0_119 = arith.constant 0 : index
    %c5_120 = arith.constant 5 : index
    %c0_121 = arith.constant 0 : index
    %c0_122 = arith.constant 0 : index
    %304 = vector.load %arg2[%c0_119, %c5_120, %c0_121, %c0_122] : memref<2x8x8x96xf32, #tpu.memory_space<vmem>>, vector<1x1x8x96xf32>
    %305 = vector.shape_cast %304 : vector<1x1x8x96xf32> to vector<8x96xf32>
    %c1_123 = arith.constant 1 : index
    %c5_124 = arith.constant 5 : index
    %c0_125 = arith.constant 0 : index
    %c0_126 = arith.constant 0 : index
    %306 = vector.load %arg2[%c1_123, %c5_124, %c0_125, %c0_126] : memref<2x8x8x96xf32, #tpu.memory_space<vmem>>, vector<1x1x8x96xf32>
    %307 = vector.shape_cast %306 : vector<1x1x8x96xf32> to vector<8x96xf32>
    %308 = vector.extract_strided_slice %189 {offsets = [5, 0], sizes = [1, 96], strides = [1, 1]} : vector<8x96xf32> to vector<1x96xf32>
    %309 = vector.shape_cast %308 : vector<1x96xf32> to vector<96xf32>
    %310 = vector.shape_cast %309 : vector<96xf32> to vector<1x96xf32>
    %311 = vector.extract_strided_slice %191 {offsets = [5, 0], sizes = [1, 96], strides = [1, 1]} : vector<8x96xf32> to vector<1x96xf32>
    %312 = vector.shape_cast %311 : vector<1x96xf32> to vector<96xf32>
    %313 = vector.shape_cast %312 : vector<96xf32> to vector<1x96xf32>
    %314 = vector.broadcast %310 : vector<1x96xf32> to vector<8x96xf32>
    %315 = arith.mulf %314, %305 : vector<8x96xf32>
    %316 = arith.addf %297, %315 : vector<8x96xf32>
    %317 = vector.broadcast %313 : vector<1x96xf32> to vector<8x96xf32>
    %318 = arith.mulf %317, %307 : vector<8x96xf32>
    %319 = arith.subf %316, %318 : vector<8x96xf32>
    %320 = vector.broadcast %310 : vector<1x96xf32> to vector<8x96xf32>
    %321 = arith.mulf %320, %307 : vector<8x96xf32>
    %322 = arith.addf %303, %321 : vector<8x96xf32>
    %323 = vector.broadcast %313 : vector<1x96xf32> to vector<8x96xf32>
    %324 = arith.mulf %323, %305 : vector<8x96xf32>
    %325 = arith.addf %322, %324 : vector<8x96xf32>
    %c0_127 = arith.constant 0 : index
    %c6_128 = arith.constant 6 : index
    %c0_129 = arith.constant 0 : index
    %c0_130 = arith.constant 0 : index
    %326 = vector.load %arg2[%c0_127, %c6_128, %c0_129, %c0_130] : memref<2x8x8x96xf32, #tpu.memory_space<vmem>>, vector<1x1x8x96xf32>
    %327 = vector.shape_cast %326 : vector<1x1x8x96xf32> to vector<8x96xf32>
    %c1_131 = arith.constant 1 : index
    %c6_132 = arith.constant 6 : index
    %c0_133 = arith.constant 0 : index
    %c0_134 = arith.constant 0 : index
    %328 = vector.load %arg2[%c1_131, %c6_132, %c0_133, %c0_134] : memref<2x8x8x96xf32, #tpu.memory_space<vmem>>, vector<1x1x8x96xf32>
    %329 = vector.shape_cast %328 : vector<1x1x8x96xf32> to vector<8x96xf32>
    %330 = vector.extract_strided_slice %189 {offsets = [6, 0], sizes = [1, 96], strides = [1, 1]} : vector<8x96xf32> to vector<1x96xf32>
    %331 = vector.shape_cast %330 : vector<1x96xf32> to vector<96xf32>
    %332 = vector.shape_cast %331 : vector<96xf32> to vector<1x96xf32>
    %333 = vector.extract_strided_slice %191 {offsets = [6, 0], sizes = [1, 96], strides = [1, 1]} : vector<8x96xf32> to vector<1x96xf32>
    %334 = vector.shape_cast %333 : vector<1x96xf32> to vector<96xf32>
    %335 = vector.shape_cast %334 : vector<96xf32> to vector<1x96xf32>
    %336 = vector.broadcast %332 : vector<1x96xf32> to vector<8x96xf32>
    %337 = arith.mulf %336, %327 : vector<8x96xf32>
    %338 = arith.addf %319, %337 : vector<8x96xf32>
    %339 = vector.broadcast %335 : vector<1x96xf32> to vector<8x96xf32>
    %340 = arith.mulf %339, %329 : vector<8x96xf32>
    %341 = arith.subf %338, %340 : vector<8x96xf32>
    %342 = vector.broadcast %332 : vector<1x96xf32> to vector<8x96xf32>
    %343 = arith.mulf %342, %329 : vector<8x96xf32>
    %344 = arith.addf %325, %343 : vector<8x96xf32>
    %345 = vector.broadcast %335 : vector<1x96xf32> to vector<8x96xf32>
    %346 = arith.mulf %345, %327 : vector<8x96xf32>
    %347 = arith.addf %344, %346 : vector<8x96xf32>
    %c0_135 = arith.constant 0 : index
    %c7_136 = arith.constant 7 : index
    %c0_137 = arith.constant 0 : index
    %c0_138 = arith.constant 0 : index
    %348 = vector.load %arg2[%c0_135, %c7_136, %c0_137, %c0_138] : memref<2x8x8x96xf32, #tpu.memory_space<vmem>>, vector<1x1x8x96xf32>
    %349 = vector.shape_cast %348 : vector<1x1x8x96xf32> to vector<8x96xf32>
    %c1_139 = arith.constant 1 : index
    %c7_140 = arith.constant 7 : index
    %c0_141 = arith.constant 0 : index
    %c0_142 = arith.constant 0 : index
    %350 = vector.load %arg2[%c1_139, %c7_140, %c0_141, %c0_142] : memref<2x8x8x96xf32, #tpu.memory_space<vmem>>, vector<1x1x8x96xf32>
    %351 = vector.shape_cast %350 : vector<1x1x8x96xf32> to vector<8x96xf32>
    %352 = vector.extract_strided_slice %189 {offsets = [7, 0], sizes = [1, 96], strides = [1, 1]} : vector<8x96xf32> to vector<1x96xf32>
    %353 = vector.shape_cast %352 : vector<1x96xf32> to vector<96xf32>
    %354 = vector.shape_cast %353 : vector<96xf32> to vector<1x96xf32>
    %355 = vector.extract_strided_slice %191 {offsets = [7, 0], sizes = [1, 96], strides = [1, 1]} : vector<8x96xf32> to vector<1x96xf32>
    %356 = vector.shape_cast %355 : vector<1x96xf32> to vector<96xf32>
    %357 = vector.shape_cast %356 : vector<96xf32> to vector<1x96xf32>
    %358 = vector.broadcast %354 : vector<1x96xf32> to vector<8x96xf32>
    %359 = arith.mulf %358, %349 : vector<8x96xf32>
    %360 = arith.addf %341, %359 : vector<8x96xf32>
    %361 = vector.broadcast %357 : vector<1x96xf32> to vector<8x96xf32>
    %362 = arith.mulf %361, %351 : vector<8x96xf32>
    %363 = arith.subf %360, %362 : vector<8x96xf32>
    %364 = vector.broadcast %354 : vector<1x96xf32> to vector<8x96xf32>
    %365 = arith.mulf %364, %351 : vector<8x96xf32>
    %366 = arith.addf %347, %365 : vector<8x96xf32>
    %367 = vector.broadcast %357 : vector<1x96xf32> to vector<8x96xf32>
    %368 = arith.mulf %367, %349 : vector<8x96xf32>
    %369 = arith.addf %366, %368 : vector<8x96xf32>
    %c0_143 = arith.constant 0 : index
    %c1_144 = arith.constant 1 : index
    %c0_145 = arith.constant 0 : index
    %c0_146 = arith.constant 0 : index
    %370 = vector.load %arg3[%c0_143, %c1_144, %c0_145, %c0_146] : memref<2x2x8x96xf32, #tpu.memory_space<vmem>>, vector<1x1x8x96xf32>
    %371 = vector.shape_cast %370 : vector<1x1x8x96xf32> to vector<8x96xf32>
    %372 = vector.shape_cast %363 : vector<8x96xf32> to vector<1x1x8x96xf32>
    tpu.vector_store %arg3[%c0_143, %c1_144, %c0_145, %c0_146], %372 {strides = array<i32>} : memref<2x2x8x96xf32, #tpu.memory_space<vmem>>, vector<1x1x8x96xf32>,
    %c1_147 = arith.constant 1 : index
    %c1_148 = arith.constant 1 : index
    %c0_149 = arith.constant 0 : index
    %c0_150 = arith.constant 0 : index
    %373 = vector.load %arg3[%c1_147, %c1_148, %c0_149, %c0_150] : memref<2x2x8x96xf32, #tpu.memory_space<vmem>>, vector<1x1x8x96xf32>
    %374 = vector.shape_cast %373 : vector<1x1x8x96xf32> to vector<8x96xf32>
    %375 = vector.shape_cast %369 : vector<8x96xf32> to vector<1x1x8x96xf32>
    tpu.vector_store %arg3[%c1_147, %c1_148, %c0_149, %c0_150], %375 {strides = array<i32>} : memref<2x2x8x96xf32, #tpu.memory_space<vmem>>, vector<1x1x8x96xf32>,
    return
  }
}

module attributes {stable_mosaic.version = 11 : i64} {
  func.func @pointwise_kernel(%arg0: i32, %arg1: memref<1x8x768xf32, #tpu.memory_space<vmem>>, %arg2: memref<1x8x768xf32, #tpu.memory_space<vmem>>, %arg3: memref<1x2x768xf32, #tpu.memory_space<vmem>>, %arg4: memref<4x8x8xf32, #tpu.memory_space<vmem>>, %arg5: memref<3x8x1xf32, #tpu.memory_space<vmem>>, %arg6: memref<1x8x768xf32, #tpu.memory_space<vmem>>) attributes {dimension_semantics = [#tpu.dimension_semantics<parallel>], iteration_bounds = array<i64: 2>, scalar_prefetch = 0 : i64, scratch_operands = 0 : i64, tpu.core_type = #tpu.core_type<tc>, window_params = [{transform_indices = @transform_0, window_bounds = array<i64: 1, 8, 768>}, {transform_indices = @transform_1, window_bounds = array<i64: 1, 8, 768>}, {transform_indices = @transform_2, window_bounds = array<i64: 1, 2, 768>}, {pipeline_mode = #tpu.pipeline_mode<synchronous>, transform_indices = @transform_3, window_bounds = array<i64: 4, 8, 8>}, {pipeline_mode = #tpu.pipeline_mode<synchronous>, transform_indices = @transform_4, window_bounds = array<i64: 3, 8, 1>}, {transform_indices = @transform_5, window_bounds = array<i64: 1, 8, 768>}]} {
    %c0 = arith.constant 0 : index
    %c0_0 = arith.constant 0 : index
    %c0_1 = arith.constant 0 : index
    %0 = vector.load %arg1[%c0, %c0_0, %c0_1] : memref<1x8x768xf32, #tpu.memory_space<vmem>>, vector<1x8x768xf32>
    %1 = vector.shape_cast %0 : vector<1x8x768xf32> to vector<8x768xf32>
    %c0_2 = arith.constant 0 : index
    %c0_3 = arith.constant 0 : index
    %c0_4 = arith.constant 0 : index
    %2 = vector.load %arg4[%c0_2, %c0_3, %c0_4] : memref<4x8x8xf32, #tpu.memory_space<vmem>>, vector<1x8x8xf32>
    %3 = vector.shape_cast %2 : vector<1x8x8xf32> to vector<8x8xf32>
    %cst = arith.constant dense<0.000000e+00> : vector<8x768xf32>
    %4 = tpu.matmul %3, %1, %cst {dimension_numbers = #tpu.dot_dimension_numbers<[1], [0], [0], [1], [0, 0, 1, 1], [], []>} : vector<8x8xf32>, vector<8x768xf32>, vector<8x768xf32> -> vector<8x768xf32>
    %c0_5 = arith.constant 0 : index
    %c0_6 = arith.constant 0 : index
    %c0_7 = arith.constant 0 : index
    %5 = vector.load %arg5[%c0_5, %c0_6, %c0_7] : memref<3x8x1xf32, #tpu.memory_space<vmem>>, vector<1x8x1xf32>
    %6 = vector.shape_cast %5 : vector<1x8x1xf32> to vector<8x1xf32>
    %7 = vector.broadcast %6 : vector<8x1xf32> to vector<8x768xf32>
    %8 = arith.addf %4, %7 : vector<8x768xf32>
    %cst_8 = arith.constant 5.000000e-01 : f32
    %9 = vector.broadcast %cst_8 : f32 to vector<8x768xf32>
    %10 = arith.mulf %9, %8 : vector<8x768xf32>
    %cst_9 = arith.constant 0.707106769 : f32
    %11 = vector.broadcast %cst_9 : f32 to vector<8x768xf32>
    %12 = arith.mulf %8, %11 : vector<8x768xf32>
    %13 = math.erf %12 : vector<8x768xf32>
    %cst_10 = arith.constant 1.000000e+00 : f32
    %14 = vector.broadcast %cst_10 : f32 to vector<8x768xf32>
    %15 = arith.addf %14, %13 : vector<8x768xf32>
    %16 = arith.mulf %10, %15 : vector<8x768xf32>
    %c1 = arith.constant 1 : index
    %c0_11 = arith.constant 0 : index
    %c0_12 = arith.constant 0 : index
    %17 = vector.load %arg4[%c1, %c0_11, %c0_12] : memref<4x8x8xf32, #tpu.memory_space<vmem>>, vector<1x8x8xf32>
    %18 = vector.shape_cast %17 : vector<1x8x8xf32> to vector<8x8xf32>
    %cst_13 = arith.constant dense<0.000000e+00> : vector<8x768xf32>
    %19 = tpu.matmul %18, %16, %cst_13 {dimension_numbers = #tpu.dot_dimension_numbers<[1], [0], [0], [1], [0, 0, 1, 1], [], []>} : vector<8x8xf32>, vector<8x768xf32>, vector<8x768xf32> -> vector<8x768xf32>
    %c1_14 = arith.constant 1 : index
    %c0_15 = arith.constant 0 : index
    %c0_16 = arith.constant 0 : index
    %20 = vector.load %arg5[%c1_14, %c0_15, %c0_16] : memref<3x8x1xf32, #tpu.memory_space<vmem>>, vector<1x8x1xf32>
    %21 = vector.shape_cast %20 : vector<1x8x1xf32> to vector<8x1xf32>
    %22 = vector.broadcast %21 : vector<8x1xf32> to vector<8x768xf32>
    %23 = arith.addf %19, %22 : vector<8x768xf32>
    %c2 = arith.constant 2 : index
    %c0_17 = arith.constant 0 : index
    %c0_18 = arith.constant 0 : index
    %24 = vector.load %arg4[%c2, %c0_17, %c0_18] : memref<4x8x8xf32, #tpu.memory_space<vmem>>, vector<1x8x8xf32>
    %25 = vector.shape_cast %24 : vector<1x8x8xf32> to vector<8x8xf32>
    %c0_19 = arith.constant 0 : index
    %c0_20 = arith.constant 0 : index
    %c0_21 = arith.constant 0 : index
    %26 = vector.load %arg2[%c0_19, %c0_20, %c0_21] : memref<1x8x768xf32, #tpu.memory_space<vmem>>, vector<1x8x768xf32>
    %27 = vector.shape_cast %26 : vector<1x8x768xf32> to vector<8x768xf32>
    %cst_22 = arith.constant dense<0.000000e+00> : vector<8x768xf32>
    %28 = tpu.matmul %25, %27, %cst_22 {dimension_numbers = #tpu.dot_dimension_numbers<[1], [0], [0], [1], [0, 0, 1, 1], [], []>} : vector<8x8xf32>, vector<8x768xf32>, vector<8x768xf32> -> vector<8x768xf32>
    %c0_23 = arith.constant 0 : index
    %c0_24 = arith.constant 0 : index
    %c0_25 = arith.constant 0 : index
    %29 = vector.load %arg3[%c0_23, %c0_24, %c0_25] : memref<1x2x768xf32, #tpu.memory_space<vmem>>, vector<1x2x768xf32>
    %30 = vector.shape_cast %29 : vector<1x2x768xf32> to vector<2x768xf32>
    %c3 = arith.constant 3 : index
    %c0_26 = arith.constant 0 : index
    %c0_27 = arith.constant 0 : index
    %31 = vector.load %arg4[%c3, %c0_26, %c0_27] : memref<4x8x8xf32, #tpu.memory_space<vmem>>, vector<1x8x8xf32>
    %32 = vector.shape_cast %31 : vector<1x8x8xf32> to vector<8x8xf32>
    %33 = vector.extract_strided_slice %32 {offsets = [0, 0], sizes = [8, 1], strides = [1, 1]} : vector<8x8xf32> to vector<8x1xf32>
    %34 = vector.extract_strided_slice %30 {offsets = [0, 0], sizes = [1, 768], strides = [1, 1]} : vector<2x768xf32> to vector<1x768xf32>
    %35 = vector.broadcast %33 : vector<8x1xf32> to vector<8x768xf32>
    %36 = vector.broadcast %34 : vector<1x768xf32> to vector<8x768xf32>
    %37 = arith.mulf %35, %36 : vector<8x768xf32>
    %38 = vector.extract_strided_slice %32 {offsets = [0, 1], sizes = [8, 1], strides = [1, 1]} : vector<8x8xf32> to vector<8x1xf32>
    %39 = vector.extract_strided_slice %30 {offsets = [1, 0], sizes = [1, 768], strides = [1, 1]} : vector<2x768xf32> to vector<1x768xf32>
    %40 = vector.broadcast %38 : vector<8x1xf32> to vector<8x768xf32>
    %41 = vector.broadcast %39 : vector<1x768xf32> to vector<8x768xf32>
    %42 = arith.mulf %40, %41 : vector<8x768xf32>
    %43 = arith.addf %37, %42 : vector<8x768xf32>
    %44 = arith.addf %23, %28 : vector<8x768xf32>
    %45 = arith.addf %44, %43 : vector<8x768xf32>
    %c2_28 = arith.constant 2 : index
    %c0_29 = arith.constant 0 : index
    %c0_30 = arith.constant 0 : index
    %46 = vector.load %arg5[%c2_28, %c0_29, %c0_30] : memref<3x8x1xf32, #tpu.memory_space<vmem>>, vector<1x8x1xf32>
    %47 = vector.shape_cast %46 : vector<1x8x1xf32> to vector<8x1xf32>
    %48 = vector.broadcast %47 : vector<8x1xf32> to vector<8x768xf32>
    %49 = arith.addf %45, %48 : vector<8x768xf32>
    %cst_31 = arith.constant 5.000000e-01 : f32
    %50 = vector.broadcast %cst_31 : f32 to vector<8x768xf32>
    %51 = arith.mulf %50, %49 : vector<8x768xf32>
    %cst_32 = arith.constant 0.707106769 : f32
    %52 = vector.broadcast %cst_32 : f32 to vector<8x768xf32>
    %53 = arith.mulf %49, %52 : vector<8x768xf32>
    %54 = math.erf %53 : vector<8x768xf32>
    %cst_33 = arith.constant 1.000000e+00 : f32
    %55 = vector.broadcast %cst_33 : f32 to vector<8x768xf32>
    %56 = arith.addf %55, %54 : vector<8x768xf32>
    %57 = arith.mulf %51, %56 : vector<8x768xf32>
    %c0_34 = arith.constant 0 : index
    %c0_35 = arith.constant 0 : index
    %c0_36 = arith.constant 0 : index
    %58 = vector.load %arg6[%c0_34, %c0_35, %c0_36] : memref<1x8x768xf32, #tpu.memory_space<vmem>>, vector<1x8x768xf32>
    %59 = vector.shape_cast %58 : vector<1x8x768xf32> to vector<8x768xf32>
    %60 = vector.shape_cast %57 : vector<8x768xf32> to vector<1x8x768xf32>
    tpu.vector_store %arg6[%c0_34, %c0_35, %c0_36], %60 {strides = array<i32>} : memref<1x8x768xf32, #tpu.memory_space<vmem>>, vector<1x8x768xf32>,
    return
  }
  func.func @transform_0(%arg0: i32) -> (i32, i32, i32) {
    %c0_i32 = arith.constant 0 : i32
    %c0_i32_0 = arith.constant 0 : i32
    %c0_i32_1 = arith.constant 0 : i32
    return %arg0, %c0_i32, %c0_i32_0 : i32, i32, i32
  }
  func.func @transform_1(%arg0: i32) -> (i32, i32, i32) {
    %c0_i32 = arith.constant 0 : i32
    %c0_i32_0 = arith.constant 0 : i32
    %c0_i32_1 = arith.constant 0 : i32
    return %arg0, %c0_i32, %c0_i32_0 : i32, i32, i32
  }
  func.func @transform_2(%arg0: i32) -> (i32, i32, i32) {
    %c0_i32 = arith.constant 0 : i32
    %c0_i32_0 = arith.constant 0 : i32
    %c0_i32_1 = arith.constant 0 : i32
    return %arg0, %c0_i32, %c0_i32_0 : i32, i32, i32
  }
  func.func @transform_3(%arg0: i32) -> (i32, i32, i32) {
    %c0_i32 = arith.constant 0 : i32
    %c0_i32_0 = arith.constant 0 : i32
    %c0_i32_1 = arith.constant 0 : i32
    %c0_i32_2 = arith.constant 0 : i32
    return %c0_i32, %c0_i32_0, %c0_i32_1 : i32, i32, i32
  }
  func.func @transform_4(%arg0: i32) -> (i32, i32, i32) {
    %c0_i32 = arith.constant 0 : i32
    %c0_i32_0 = arith.constant 0 : i32
    %c0_i32_1 = arith.constant 0 : i32
    %c0_i32_2 = arith.constant 0 : i32
    return %c0_i32, %c0_i32_0, %c0_i32_1 : i32, i32, i32
  }
  func.func @transform_5(%arg0: i32) -> (i32, i32, i32) {
    %c0_i32 = arith.constant 0 : i32
    %c0_i32_0 = arith.constant 0 : i32
    %c0_i32_1 = arith.constant 0 : i32
    return %arg0, %c0_i32, %c0_i32_0 : i32, i32, i32
  }
}

</mosaic_0001>

<bundles_post_ra>
// kernel: _lambda_.2
= control target key start
LH: loop header
LB: loop body
LE: loop exit
PB: predicated region body
PF: predicated region fallthrough
CT: control target
= control target key end

     0   :  { %v19_v0 = vlaneseq  ;;  %vm175_vm0 = vcmask 785408   ;;  %s672_s0 = inlined_call_operand.vmem [shape: f32[2,8,96], index: 0, kind: input, shape index: {}]   ;;  %s673_s1 = inlined_call_operand.vmem [shape: f32[2,8,96], index: 1, kind: input, shape index: {}]   ;;  %s674_s2 = inlined_call_operand.vmem [shape: f32[2,8,8,96], index: 2, kind: input, shape index: {}]   ;;  %s675_s3 = inlined_call_operand.vmem [shape: f32[2,2,8,96], index: 3, kind: output, shape index: {}]  }
   0x1   :  { %v393_v2 = vld [vmem:[%s672_s0] sm:$0xff]  ;;  %v417_v9 = vld [vmem:[%s674_s2 + $0x8] sm:$0xff]  ;;  %v440_v20 = vld [vmem:[%s674_s2 + $0x10] sm:$0xff] }
   0x2   :  { %v20_v1 = vshrl.u32 %v19_v0, 7  ;;  %v398_v3 = vld [vmem:[%s673_s1] sm:$0xff]  ;;  %v435_v19 = vld [vmem:[%s674_s2 + $0x48] sm:$0xff]  ;;  %v453_v28 = vld [vmem:[%s674_s2 + $0x50] sm:$0xff] }
   0x3   :  { %v407_v7 = vld [vmem:[%s674_s2] sm:$0xff]  ;;  %v458_v29 = vld [vmem:[%s674_s2 + $0x18] sm:$0xff]  ;;  %v500_v50 = vld [vmem:[%s672_s0 + $0x8] sm:$0xff] }
   0x4   :  { %v21_v4 = vsub.s32 0, %v20_v1  ;;  %v400_v5 = vsub.s32 1, %v20_v1  ;;  %v402_v6 = vsub.s32 2, %v20_v1  ;;  %v412_v8 = vld [vmem:[%s674_s2 + $0x40] sm:$0xff]  ;;  %v425_v14 = vsub.s32 3, %v20_v1  ;;  %v477_v41 = vld [vmem:[%s674_s2 + $0x58] sm:$0xff] }
   0x5   :  { %v445_v24 = vsub.s32 4, %v20_v1  ;;  %v462_v31 = vsub.s32 5, %v20_v1  ;;  %v464_v32 = vsub.s32 6, %v20_v1  ;;  %v483_v43 = vld [vmem:[%s674_s2 + $0x20] sm:$0xff]  ;;  %v505_v51 = vld [vmem:[%s673_s1 + $0x8] sm:$0xff]  ;;  %v519_v59 = vsub.s32 7, %v20_v1 }
   0x6   :  { %v22_v10 = vrot.slane %v393_v2, %v21_v4  ;;  %v28_v11 = vrot.slane %v398_v3, %v21_v4  ;;  %v42_v12 = vrot.slane %v393_v2, %v400_v5  ;;  %v48_v13 = vrot.slane %v398_v3, %v400_v5  ;;  %v510_v53 = vld [vmem:[%s674_s2 + $0x60] sm:$0xff]  ;;  %v525_v62 = vld [vmem:[%s674_s2 + $0x28] sm:$0xff] }
   0x7   :  { %v62_v18 = vrot.slane %v393_v2, %v402_v6  ;;  %v68_v23 = vrot.slane %v398_v3, %v402_v6  ;;  %v82_v27 = vrot.slane %v393_v2, %v425_v14  ;;  %v88_v30 = vrot.slane %v398_v3, %v425_v14 }
   0x8   :  { %v23_v15 = vmul.f32 %v22_v10, %v407_v7  ;;  %v29_v16 = vmul.f32 %v412_v8, %v28_v11  ;;  %v43_v17 = vmul.f32 %v417_v9, %v42_v12  ;;  %v49_v22 = vmul.f32 %v435_v19, %v48_v13 }
   0x9   :  { %v63_v26 = vmul.f32 %v440_v20, %v62_v18  ;;  %v69_v34 = vmul.f32 %v453_v28, %v68_v23  ;;  %v31_v35 = vmul.f32 %v412_v8, %v22_v10  ;;  %v33_v36 = vmul.f32 %v28_v11, %v407_v7 }
   0xa   :  { %v30_v21 = vsub.f32 %v23_v15, %v29_v16  ;;  %v102_v37 = vrot.slane %v393_v2, %v445_v24  ;;  %v108_v38 = vrot.slane %v398_v3, %v445_v24  ;;  %v51_v39 = vmul.f32 %v435_v19, %v42_v12 }
   0xb   :  { %v83_v42 = vmul.f32 %v458_v29, %v82_v27  ;;  %v34_v44 = vadd.f32 %v33_v36, %v31_v35  ;;  %v53_v45 = vmul.f32 %v417_v9, %v48_v13  ;;  %v89_v46 = vmul.f32 %v477_v41, %v88_v30 }
   0xc   :  { %v44_v25 = vadd.f32 %v43_v17, %v30_v21  ;;  %v122_v47 = vrot.slane %v393_v2, %v462_v31  ;;  %v491_v48 = vrot.slane %v398_v3, %v462_v31  ;;  %v495_v49 = vrot.slane %v393_v2, %v464_v32 }
   0xd   :  { %v514_v54 = vrot.slane %v398_v3, %v464_v32  ;;  %v52_v55 = vadd.f32 %v51_v39, %v34_v44  ;;  %v71_v56 = vmul.f32 %v453_v28, %v62_v18  ;;  %v103_v57 = vmul.f32 %v483_v43, %v102_v37 }
   0xe   :  { %v50_v33 = vsub.f32 %v44_v25, %v49_v22  ;;  %v109_v58 = vmul.f32 %v510_v53, %v108_v38  ;;  %v73_v60 = vmul.f32 %v440_v20, %v68_v23  ;;  %v188_v0 = vrot.slane %v500_v50, %v21_v4  ;;  %v552_v25 = vld [vmem:[%s674_s2 + $0x68] sm:$0xff] }
   0xf   :  { %v54_v63 = vadd.f32 %v53_v45, %v52_v55  ;;  %v194_v10 = vrot.slane %v505_v51, %v21_v4  ;;  %v91_v11 = vmul.f32 %v477_v41, %v82_v27  ;;  %v206_v12 = vrot.slane %v500_v50, %v400_v5 }
  0x10   :  { %v64_v40 = vadd.f32 %v63_v26, %v50_v33  ;;  %v534_v1 = vrot.slane %v505_v51, %v400_v5  ;;  %v538_v13 = vrot.slane %v500_v50, %v402_v6  ;;  %v189_v17 = vmul.f32 %v188_v0, %v407_v7  ;;  %v557_v26 = vld [vmem:[%s674_s2 + $0x30] sm:$0xff] }
  0x11   :  { %v72_v16 = vadd.f32 %v71_v56, %v54_v63  ;;  %v195_v18 = vmul.f32 %v412_v8, %v194_v10  ;;  %v123_v4 = vmul.f32 %v525_v62, %v122_v47  ;;  %v93_v21 = vmul.f32 %v458_v29, %v88_v30  ;;  %v587_v56 = vld [vmem:[%s674_s2 + $0x70] sm:$0xff] }
  0x12   :  { %v70_v52 = vsub.f32 %v64_v40, %v69_v34  ;;  %v207_v22 = vmul.f32 %v417_v9, %v206_v12  ;;  %v547_v5 = vrot.slane %v505_v51, %v402_v6  ;;  %v213_v30 = vmul.f32 %v435_v19, %v534_v1  ;;  %v571_v40 = vld [vmem:[%s674_s2 + $0x38] sm:$0xff] }
  0x13   :  { %v74_v27 = vadd.f32 %v73_v60, %v72_v16  ;;  %v196_v33 = vsub.f32 %v189_v17, %v195_v18  ;;  %v129_v6 = vmul.f32 %v552_v25, %v491_v48  ;;  %v162_v34 = vrot.slane %v393_v2, %v519_v59 }
  0x14   :  { %v84_v61 = vadd.f32 %v83_v42, %v70_v52  ;;  %v111_v35 = vmul.f32 %v510_v53, %v102_v37  ;;  %v225_v36 = vmul.f32 %v440_v20, %v538_v13  ;;  %v242_v45 = vrot.slane %v500_v50, %v425_v14 }
  0x15   :  { %v92_v42 = vadd.f32 %v91_v11, %v74_v27  ;;  %v208_v44 = vadd.f32 %v207_v22, %v196_v33  ;;  %v168_v2 = vrot.slane %v398_v3, %v519_v59  ;;  %v113_v37 = vmul.f32 %v483_v43, %v108_v38  ;;  %v600_v11 = vld [vmem:[%s674_s2 + $0x78] sm:$0xff] }
  0x16   :  { %v90_v15 = vsub.f32 %v84_v61, %v89_v46  ;;  %v143_v46 = vmul.f32 %v557_v26, %v495_v49  ;;  %v582_v52 = vrot.slane %v505_v51, %v425_v14  ;;  %v231_v60 = vmul.f32 %v453_v28, %v547_v5 }
  0x17   :  { %v149_v3 = vmul.f32 %v587_v56, %v514_v54  ;;  %v163_v38 = vmul.f32 %v571_v40, %v162_v34  ;;  %v131_v14 = vmul.f32 %v552_v25, %v122_v47  ;;  %v260_v61 = vrot.slane %v500_v50, %v445_v24 }
  0x18   :  { %v104_v23 = vadd.f32 %v103_v57, %v90_v15  ;;  %v94_v57 = vadd.f32 %v93_v21, %v92_v42  ;;  %v243_v17 = vmul.f32 %v458_v29, %v242_v45  ;;  %v169_v18 = vmul.f32 %v600_v11, %v168_v2 }
  0x19   :  { %v249_v47 = vmul.f32 %v477_v41, %v582_v52  ;;  %v266_v21 = vrot.slane %v505_v51, %v445_v24  ;;  %v197_v33 = vmul.f32 %v412_v8, %v188_v0  ;;  %v261_v24 = vmul.f32 %v483_v43, %v260_v61 }
  0x1a   :  { %v110_v39 = vsub.f32 %v104_v23, %v109_v58  ;;  %v214_v58 = vsub.f32 %v208_v44, %v213_v30  ;;  %v112_v15 = vadd.f32 %v111_v35, %v94_v57  ;;  %v151_v30 = vmul.f32 %v587_v56, %v495_v49 }
  0x1b   :  { %v199_v35 = vmul.f32 %v194_v10, %v407_v7  ;;  %v153_v44 = vmul.f32 %v557_v26, %v514_v54  ;;  %v267_v8 = vmul.f32 %v510_v53, %v266_v21  ;;  %v217_v49 = vmul.f32 %v417_v9, %v534_v1 }
  0x1c   :  { %v124_v55 = vadd.f32 %v123_v4, %v110_v39  ;;  %v226_v16 = vadd.f32 %v225_v36, %v214_v58  ;;  %v133_v4 = vmul.f32 %v525_v62, %v491_v48  ;;  %v114_v23 = vadd.f32 %v113_v37, %v112_v15 }
  0x1d   :  { %v215_v48 = vmul.f32 %v435_v19, %v206_v12  ;;  %v200_v0 = vadd.f32 %v199_v35, %v197_v33  ;;  %v284_v7 = vrot.slane %v505_v51, %v462_v31  ;;  %v171_v19 = vmul.f32 %v600_v11, %v162_v34 }
  0x1e   :  { %v130_v63 = vsub.f32 %v124_v55, %v129_v6  ;;  %v232_v27 = vsub.f32 %v226_v16, %v231_v60  ;;  %v278_v6 = vrot.slane %v500_v50, %v462_v31  ;;  %v132_v39 = vadd.f32 %v131_v14, %v114_v23 }
  0x1f   :  { %v216_v12 = vadd.f32 %v215_v48, %v200_v0  ;;  %v233_v54 = vmul.f32 %v453_v28, %v538_v13  ;;  %v296_v9 = vrot.slane %v500_v50, %v464_v32  ;;  %v173_v1 = vmul.f32 %v571_v40, %v168_v2 }
  0x20   :  { %v144_v22 = vadd.f32 %v143_v46, %v130_v63  ;;  %v244_v42 = vadd.f32 %v243_v17, %v232_v27  ;;  %v134_v37 = vadd.f32 %v133_v4, %v132_v39  ;;  %v279_v10 = vmul.f32 %v525_v62, %v278_v6 }
  0x21   :  { %v235_v31 = vmul.f32 %v440_v20, %v547_v5  ;;  %v285_v28 = vmul.f32 %v552_v25, %v284_v7  ;;  %v302_v13 = vrot.slane %v505_v51, %v464_v32  ;;  %v251_v63 = vmul.f32 %v477_v41, %v242_v45 }
  0x22   :  { %v150_v36 = vsub.f32 %v144_v22, %v149_v3  ;;  %v250_v55 = vsub.f32 %v244_v42, %v249_v47  ;;  %v152_v58 = vadd.f32 %v151_v30, %v134_v37  ;;  %v218_v3 = vadd.f32 %v217_v49, %v216_v12 }
  0x23   :  { %v297_v16 = vmul.f32 %v557_v26, %v296_v9  ;;  %v314_v20 = vrot.slane %v500_v50, %v519_v59  ;;  %v253_v17 = vmul.f32 %v458_v29, %v582_v52  ;;  %v303_v47 = vmul.f32 %v587_v56, %v302_v13 }
  0x24   :  { %v164_v46 = vadd.f32 %v163_v38, %v150_v36  ;;  %v262_v60 = vadd.f32 %v261_v24, %v250_v55  ;;  %v154_v34 = vadd.f32 %v153_v44, %v152_v58  ;;  %v234_v14 = vadd.f32 %v233_v54, %v218_v3 }
  0x25   :  { %v320_v32 = vrot.slane %v505_v51, %v519_v59  ;;  %v269_v41 = vmul.f32 %v510_v53, %v260_v61  ;;  %v315_v45 = vmul.f32 %v571_v40, %v314_v20  ;;  %v271_v29 = vmul.f32 %v483_v43, %v266_v21 }
  0x26   :  { %v170_v57 = vsub.f32 %v164_v46, %v169_v18  ;;  %v268_v38 = vsub.f32 %v262_v60, %v267_v8  ;;  %v172_v2 = vadd.f32 %v171_v19, %v154_v34  ;;  %v236_v5 = vadd.f32 %v235_v31, %v234_v14 }
  0x27   :  { %v321_v27 = vmul.f32 %v600_v11, %v320_v32  ;;  %v287_v51 = vmul.f32 %v552_v25, %v278_v6  ;;  %v289_v53 = vmul.f32 %v525_v62, %v284_v7  ;;  %v305_v48 = vmul.f32 %v587_v56, %v296_v9 }
  0x28   :  { %176 = vst.msk [vmem:[%s675_s3] sm:$0xff] %vm175_vm0, %v170_v57  ;;  %v280_v15 = vadd.f32 %v279_v10, %v268_v38  ;;  %v174_v18 = vadd.f32 %v173_v1, %v172_v2  ;;  %v252_v22 = vadd.f32 %v251_v63, %v236_v5  ;;  %v307_v21 = vmul.f32 %v557_v26, %v302_v13 }
  0x29   :  { %v323_v39 = vmul.f32 %v600_v11, %v314_v20  ;;  %v325_v6 = vmul.f32 %v571_v40, %v320_v32 }
  0x2a   :  { %v286_v4 = vsub.f32 %v280_v15, %v285_v28  ;;  %350 = vst.msk [vmem:[%s675_s3 + $0x10] sm:$0xff] %vm175_vm0, %v174_v18  ;;  %v254_v23 = vadd.f32 %v253_v17, %v252_v22 }
  0x2c   :  { %v298_v50 = vadd.f32 %v297_v16, %v286_v4  ;;  %v270_v33 = vadd.f32 %v269_v41, %v254_v23 }
  0x2e   :  { %v304_v52 = vsub.f32 %v298_v50, %v303_v47  ;;  %v272_v30 = vadd.f32 %v271_v29, %v270_v33 }
  0x30   :  { %v316_v59 = vadd.f32 %v315_v45, %v304_v52  ;;  %v288_v35 = vadd.f32 %v287_v51, %v272_v30 }
  0x32   :  { %v322_v61 = vsub.f32 %v316_v59, %v321_v27  ;;  %v290_v43 = vadd.f32 %v289_v53, %v288_v35 }
  0x34   :  { %368 = vst.msk [vmem:[%s675_s3 + $0x8] sm:$0xff] %vm175_vm0, %v322_v61  ;;  %v306_v36 = vadd.f32 %v305_v48, %v290_v43 }
  0x36   :  { %v308_v25 = vadd.f32 %v307_v21, %v306_v36 }
  0x38   :  { %v324_v42 = vadd.f32 %v323_v39, %v308_v25 }
  0x3a   :  { %v326_v62 = vadd.f32 %v325_v6, %v324_v42 }
  0x3c   :  { %369 = vst.msk [vmem:[%s675_s3 + $0x18] sm:$0xff] %vm175_vm0, %v326_v62 }

// kernel: reverse.0
= control target key start
LH: loop header
LB: loop body
LE: loop exit
PB: predicated region body
PF: predicated region fallthrough
CT: control target
= control target key end

     0   :  { %v232_v30 = vlaneseq  ;;  %v225_v50 = vld [vmem:[#allocation0 + $0x7] ss:$-1 sm:$0xff]  ;;  %v239_v52 = vld [vmem:[#allocation0 + $0x17] ss:$-1 sm:$0xff]  ;;  %s1662_s0 = inlined_call_operand.vmem [shape: f32[2,8,3,16,7], index: 0, kind: input, shape index: {}]   ;;  %s1663_s1 = inlined_call_operand.vmem [shape: f32[2,8,3,16,7], index: 1, kind: output, shape index: {}]  }
   0x1   :  { %v125_v0 = vld [vmem:[%s1662_s0] sm:$0xff]  ;;  %v127_v1 = vld [vmem:[%s1662_s0 + $0x8] sm:$0xff]  ;;  %v129_v2 = vld [vmem:[%s1662_s0 + $0x10] sm:$0xff]  ;;  %v226_v53 = vrot.slane %v225_v50, 1  ;;  %v240_v55 = vrot.slane %v239_v52, 1 }
   0x2   :  { %126 = vst [vmem:[#allocation0 + $0x8] sm:$0xff] %v125_v0  ;;  %128 = vst [vmem:[#allocation0 + $0x18] sm:$0xff] %v127_v1  ;;  %v131_v3 = vld [vmem:[%s1662_s0 + $0x18] sm:$0xff]  ;;  %v133_v4 = vld [vmem:[%s1662_s0 + $0x20] sm:$0xff]  ;;  %v1401_v43 = vshrl.u32 %v232_v30, 7 }
   0x3   :  { %130 = vst [vmem:[#allocation0 + $0x28] sm:$0xff] %v129_v2  ;;  %v135_v5 = vld [vmem:[%s1662_s0 + $0x28] sm:$0xff]  ;;  %132 = vst [vmem:[#allocation0 + $0x38] sm:$0xff] %v131_v3  ;;  %v137_v6 = vld [vmem:[%s1662_s0 + $0x30] sm:$0xff] }
   0x4   :  { %134 = vst [vmem:[#allocation0 + $0x48] sm:$0xff] %v133_v4  ;;  %136 = vst [vmem:[#allocation0 + $0x58] sm:$0xff] %v135_v5  ;;  %v139_v7 = vld [vmem:[%s1662_s0 + $0x38] sm:$0xff]  ;;  %v141_v8 = vld [vmem:[%s1662_s0 + $0x40] sm:$0xff]  ;;  %vm234_vm0 = vcmp.lt.s32.totalorder %v1401_v43, 7 }
   0x5   :  { %138 = vst [vmem:[#allocation0 + $0x68] sm:$0xff] %v137_v6  ;;  %140 = vst [vmem:[#allocation0 + $0x78] sm:$0xff] %v139_v7  ;;  %v143_v9 = vld [vmem:[%s1662_s0 + $0x48] sm:$0xff]  ;;  %v145_v10 = vld [vmem:[%s1662_s0 + $0x50] sm:$0xff] }
   0x6   :  { %142 = vst [vmem:[#allocation0 + $0x88] sm:$0xff] %v141_v8  ;;  %v147_v11 = vld [vmem:[%s1662_s0 + $0x58] sm:$0xff]  ;;  %144 = vst [vmem:[#allocation0 + $0x98] sm:$0xff] %v143_v9  ;;  %v149_v12 = vld [vmem:[%s1662_s0 + $0x60] sm:$0xff] }
   0x7   :  { %146 = vst [vmem:[#allocation0 + $0xa8] sm:$0xff] %v145_v10  ;;  %148 = vst [vmem:[#allocation0 + $0xb8] sm:$0xff] %v147_v11  ;;  %v151_v13 = vld [vmem:[%s1662_s0 + $0x68] sm:$0xff]  ;;  %v153_v14 = vld [vmem:[%s1662_s0 + $0x70] sm:$0xff] }
   0x8   :  { %150 = vst [vmem:[#allocation0 + $0xc8] sm:$0xff] %v149_v12  ;;  %152 = vst [vmem:[#allocation0 + $0xd8] sm:$0xff] %v151_v13  ;;  %v155_v15 = vld [vmem:[%s1662_s0 + $0x78] sm:$0xff]  ;;  %v157_v16 = vld [vmem:[%s1662_s0 + $0x80] sm:$0xff] }
   0x9   :  { %154 = vst [vmem:[#allocation0 + $0xe8] sm:$0xff] %v153_v14  ;;  %v159_v17 = vld [vmem:[%s1662_s0 + $0x88] sm:$0xff]  ;;  %156 = vst [vmem:[#allocation0 + $0xf8] sm:$0xff] %v155_v15  ;;  %v161_v18 = vld [vmem:[%s1662_s0 + $0x90] sm:$0xff] }
   0xa   :  { %158 = vst [vmem:[#allocation0 + $0x108] sm:$0xff] %v157_v16  ;;  %160 = vst [vmem:[#allocation0 + $0x118] sm:$0xff] %v159_v17  ;;  %v163_v19 = vld [vmem:[%s1662_s0 + $0x98] sm:$0xff]  ;;  %v165_v20 = vld [vmem:[%s1662_s0 + $0xa0] sm:$0xff] }
   0xb   :  { %162 = vst [vmem:[#allocation0 + $0x128] sm:$0xff] %v161_v18  ;;  %164 = vst [vmem:[#allocation0 + $0x138] sm:$0xff] %v163_v19  ;;  %v167_v21 = vld [vmem:[%s1662_s0 + $0xa8] sm:$0xff]  ;;  %v169_v22 = vld [vmem:[%s1662_s0 + $0xb0] sm:$0xff] }
   0xc   :  { %166 = vst [vmem:[#allocation0 + $0x148] sm:$0xff] %v165_v20  ;;  %v171_v23 = vld [vmem:[%s1662_s0 + $0xb8] sm:$0xff]  ;;  %168 = vst [vmem:[#allocation0 + $0x158] sm:$0xff] %v167_v21  ;;  %v173_v24 = vld [vmem:[%s1662_s0 + $0xc0] sm:$0xff] }
   0xd   :  { %170 = vst [vmem:[#allocation0 + $0x168] sm:$0xff] %v169_v22  ;;  %172 = vst [vmem:[#allocation0 + $0x178] sm:$0xff] %v171_v23  ;;  %v175_v25 = vld [vmem:[%s1662_s0 + $0xc8] sm:$0xff]  ;;  %v177_v26 = vld [vmem:[%s1662_s0 + $0xd0] sm:$0xff] }
   0xe   :  { %174 = vst [vmem:[#allocation0 + $0x188] sm:$0xff] %v173_v24  ;;  %176 = vst [vmem:[#allocation0 + $0x198] sm:$0xff] %v175_v25  ;;  %v179_v27 = vld [vmem:[%s1662_s0 + $0xd8] sm:$0xff]  ;;  %v181_v28 = vld [vmem:[%s1662_s0 + $0xe0] sm:$0xff] }
   0xf   :  { %178 = vst [vmem:[#allocation0 + $0x1a8] sm:$0xff] %v177_v26  ;;  %v183_v29 = vld [vmem:[%s1662_s0 + $0xe8] sm:$0xff]  ;;  %180 = vst [vmem:[#allocation0 + $0x1b8] sm:$0xff] %v179_v27  ;;  %v185_v31 = vld [vmem:[%s1662_s0 + $0xf0] sm:$0xff] }
  0x10   :  { %182 = vst [vmem:[#allocation0 + $0x1c8] sm:$0xff] %v181_v28  ;;  %184 = vst [vmem:[#allocation0 + $0x1d8] sm:$0xff] %v183_v29  ;;  %v187_v32 = vld [vmem:[%s1662_s0 + $0xf8] sm:$0xff]  ;;  %v189_v33 = vld [vmem:[%s1662_s0 + $0x100] sm:$0xff] }
  0x11   :  { %186 = vst [vmem:[#allocation0 + $0x1e8] sm:$0xff] %v185_v31  ;;  %188 = vst [vmem:[#allocation0 + $0x1f8] sm:$0xff] %v187_v32  ;;  %v191_v34 = vld [vmem:[%s1662_s0 + $0x108] sm:$0xff]  ;;  %v193_v35 = vld [vmem:[%s1662_s0 + $0x110] sm:$0xff] }
  0x12   :  { %190 = vst [vmem:[#allocation0 + $0x208] sm:$0xff] %v189_v33  ;;  %v195_v36 = vld [vmem:[%s1662_s0 + $0x118] sm:$0xff]  ;;  %192 = vst [vmem:[#allocation0 + $0x218] sm:$0xff] %v191_v34  ;;  %v197_v37 = vld [vmem:[%s1662_s0 + $0x120] sm:$0xff] }
  0x13   :  { %194 = vst [vmem:[#allocation0 + $0x228] sm:$0xff] %v193_v35  ;;  %196 = vst [vmem:[#allocation0 + $0x238] sm:$0xff] %v195_v36  ;;  %v199_v38 = vld [vmem:[%s1662_s0 + $0x128] sm:$0xff]  ;;  %v201_v39 = vld [vmem:[%s1662_s0 + $0x130] sm:$0xff] }
  0x14   :  { %198 = vst [vmem:[#allocation0 + $0x248] sm:$0xff] %v197_v37  ;;  %200 = vst [vmem:[#allocation0 + $0x258] sm:$0xff] %v199_v38  ;;  %v203_v40 = vld [vmem:[%s1662_s0 + $0x138] sm:$0xff]  ;;  %v205_v41 = vld [vmem:[%s1662_s0 + $0x140] sm:$0xff] }
  0x15   :  { %202 = vst [vmem:[#allocation0 + $0x268] sm:$0xff] %v201_v39  ;;  %v207_v42 = vld [vmem:[%s1662_s0 + $0x148] sm:$0xff]  ;;  %204 = vst [vmem:[#allocation0 + $0x278] sm:$0xff] %v203_v40  ;;  %v209_v44 = vld [vmem:[%s1662_s0 + $0x150] sm:$0xff] }
  0x16   :  { %206 = vst [vmem:[#allocation0 + $0x288] sm:$0xff] %v205_v41  ;;  %208 = vst [vmem:[#allocation0 + $0x298] sm:$0xff] %v207_v42  ;;  %v211_v45 = vld [vmem:[%s1662_s0 + $0x158] sm:$0xff]  ;;  %v213_v46 = vld [vmem:[%s1662_s0 + $0x160] sm:$0xff] }
  0x17   :  { %210 = vst [vmem:[#allocation0 + $0x2a8] sm:$0xff] %v209_v44  ;;  %212 = vst [vmem:[#allocation0 + $0x2b8] sm:$0xff] %v211_v45  ;;  %v215_v47 = vld [vmem:[%s1662_s0 + $0x168] sm:$0xff]  ;;  %v217_v48 = vld [vmem:[%s1662_s0 + $0x170] sm:$0xff] }
  0x18   :  { %214 = vst [vmem:[#allocation0 + $0x2c8] sm:$0xff] %v213_v46  ;;  %v219_v49 = vld [vmem:[%s1662_s0 + $0x178] sm:$0xff]  ;;  %216 = vst [vmem:[#allocation0 + $0x2d8] sm:$0xff] %v215_v47  ;;  %v230_v51 = vld [vmem:[#allocation0 + $0xf] ss:$-1 sm:$0xff] }
  0x19   :  { %218 = vst [vmem:[#allocation0 + $0x2e8] sm:$0xff] %v217_v48  ;;  %220 = vst [vmem:[#allocation0 + $0x2f8] sm:$0xff] %v219_v49  ;;  %v231_v54 = vrot.slane %v230_v51, 1  ;;  %v244_v56 = vld [vmem:[#allocation0 + $0x1f] ss:$-1 sm:$0xff] }
  0x1a   :  { %v245_v57 = vrot.slane %v244_v56, 1  ;;  %v253_v58 = vld [vmem:[#allocation0 + $0x27] ss:$-1 sm:$0xff]  ;;  %v258_v59 = vld [vmem:[#allocation0 + $0x2f] ss:$-1 sm:$0xff]  ;;  %227 = vst [vmem:[#allocation1] sm:$0xff] %v226_v53 }
  0x1b   :  { %241 = vst [vmem:[#allocation1 + $0x8] sm:$0xff] %v240_v55  ;;  %v254_v60 = vrot.slane %v253_v58, 1  ;;  %v259_v61 = vrot.slane %v258_v59, 1  ;;  %v267_v62 = vld [vmem:[#allocation0 + $0x37] ss:$-1 sm:$0xff]  ;;  %235 = vst.msk [vmem:[#allocation1] sm:$0xff] %vm234_vm0, %v231_v54 }
  0x1c   :  { %v272_v63 = vld [vmem:[#allocation0 + $0x3f] ss:$-1 sm:$0xff]  ;;  %249 = vst.msk [vmem:[#allocation1 + $0x8] sm:$0xff] %vm234_vm0, %v245_v57  ;;  %v268_v0 = vrot.slane %v267_v62, 1  ;;  %v281_v2 = vld [vmem:[#allocation0 + $0x47] ss:$-1 sm:$0xff] }
  0x1d   :  { %v273_v1 = vrot.slane %v272_v63, 1  ;;  %v286_v3 = vld [vmem:[#allocation0 + $0x4f] ss:$-1 sm:$0xff]  ;;  %255 = vst [vmem:[#allocation1 + $0x10] sm:$0xff] %v254_v60  ;;  %v282_v4 = vrot.slane %v281_v2, 1 }
  0x1e   :  { %v287_v5 = vrot.slane %v286_v3, 1  ;;  %v295_v6 = vld [vmem:[#allocation0 + $0x57] ss:$-1 sm:$0xff]  ;;  %v300_v7 = vld [vmem:[#allocation0 + $0x5f] ss:$-1 sm:$0xff]  ;;  %263 = vst.msk [vmem:[#allocation1 + $0x10] sm:$0xff] %vm234_vm0, %v259_v61 }
  0x1f   :  { %269 = vst [vmem:[#allocation1 + $0x18] sm:$0xff] %v268_v0  ;;  %v296_v8 = vrot.slane %v295_v6, 1  ;;  %v301_v9 = vrot.slane %v300_v7, 1  ;;  %v309_v10 = vld [vmem:[#allocation0 + $0x67] ss:$-1 sm:$0xff]  ;;  %283 = vst [vmem:[#allocation1 + $0x20] sm:$0xff] %v282_v4 }
  0x20   :  { %v314_v11 = vld [vmem:[#allocation0 + $0x6f] ss:$-1 sm:$0xff]  ;;  %277 = vst.msk [vmem:[#allocation1 + $0x18] sm:$0xff] %vm234_vm0, %v273_v1  ;;  %v310_v12 = vrot.slane %v309_v10, 1  ;;  %v323_v14 = vld [vmem:[#allocation0 + $0x77] ss:$-1 sm:$0xff] }
  0x21   :  { %v315_v13 = vrot.slane %v314_v11, 1  ;;  %v328_v15 = vld [vmem:[#allocation0 + $0x7f] ss:$-1 sm:$0xff]  ;;  %291 = vst.msk [vmem:[#allocation1 + $0x20] sm:$0xff] %vm234_vm0, %v287_v5  ;;  %297 = vst [vmem:[#allocation1 + $0x28] sm:$0xff] %v296_v8  ;;  %v324_v16 = vrot.slane %v323_v14, 1 }
  0x22   :  { %v329_v17 = vrot.slane %v328_v15, 1  ;;  %v337_v18 = vld [vmem:[#allocation0 + $0x87] ss:$-1 sm:$0xff]  ;;  %v342_v19 = vld [vmem:[#allocation0 + $0x8f] ss:$-1 sm:$0xff]  ;;  %305 = vst.msk [vmem:[#allocation1 + $0x28] sm:$0xff] %vm234_vm0, %v301_v9 }
  0x23   :  { %311 = vst [vmem:[#allocation1 + $0x30] sm:$0xff] %v310_v12  ;;  %v338_v20 = vrot.slane %v337_v18, 1  ;;  %v343_v21 = vrot.slane %v342_v19, 1  ;;  %v351_v22 = vld [vmem:[#allocation0 + $0x97] ss:$-1 sm:$0xff]  ;;  %325 = vst [vmem:[#allocation1 + $0x38] sm:$0xff] %v324_v16 }
  0x24   :  { %v356_v23 = vld [vmem:[#allocation0 + $0x9f] ss:$-1 sm:$0xff]  ;;  %319 = vst.msk [vmem:[#allocation1 + $0x30] sm:$0xff] %vm234_vm0, %v315_v13  ;;  %v352_v24 = vrot.slane %v351_v22, 1  ;;  %v365_v26 = vld [vmem:[#allocation0 + $0xa7] ss:$-1 sm:$0xff] }
  0x25   :  { %v357_v25 = vrot.slane %v356_v23, 1  ;;  %v370_v27 = vld [vmem:[#allocation0 + $0xaf] ss:$-1 sm:$0xff]  ;;  %333 = vst.msk [vmem:[#allocation1 + $0x38] sm:$0xff] %vm234_vm0, %v329_v17  ;;  %339 = vst [vmem:[#allocation1 + $0x40] sm:$0xff] %v338_v20  ;;  %v366_v28 = vrot.slane %v365_v26, 1 }
  0x26   :  { %v371_v29 = vrot.slane %v370_v27, 1  ;;  %v379_v30 = vld [vmem:[#allocation0 + $0xb7] ss:$-1 sm:$0xff]  ;;  %v384_v31 = vld [vmem:[#allocation0 + $0xbf] ss:$-1 sm:$0xff]  ;;  %347 = vst.msk [vmem:[#allocation1 + $0x40] sm:$0xff] %vm234_vm0, %v343_v21 }
  0x27   :  { %353 = vst [vmem:[#allocation1 + $0x48] sm:$0xff] %v352_v24  ;;  %v380_v32 = vrot.slane %v379_v30, 1  ;;  %v385_v33 = vrot.slane %v384_v31, 1  ;;  %v393_v34 = vld [vmem:[#allocation0 + $0xc7] ss:$-1 sm:$0xff]  ;;  %367 = vst [vmem:[#allocation1 + $0x50] sm:$0xff] %v366_v28 }
  0x28   :  { %v398_v35 = vld [vmem:[#allocation0 + $0xcf] ss:$-1 sm:$0xff]  ;;  %361 = vst.msk [vmem:[#allocation1 + $0x48] sm:$0xff] %vm234_vm0, %v357_v25  ;;  %v394_v36 = vrot.slane %v393_v34, 1  ;;  %v407_v38 = vld [vmem:[#allocation0 + $0xd7] ss:$-1 sm:$0xff] }
  0x29   :  { %v399_v37 = vrot.slane %v398_v35, 1  ;;  %v412_v39 = vld [vmem:[#allocation0 + $0xdf] ss:$-1 sm:$0xff]  ;;  %375 = vst.msk [vmem:[#allocation1 + $0x50] sm:$0xff] %vm234_vm0, %v371_v29  ;;  %381 = vst [vmem:[#allocation1 + $0x58] sm:$0xff] %v380_v32  ;;  %v408_v40 = vrot.slane %v407_v38, 1 }
  0x2a   :  { %v413_v41 = vrot.slane %v412_v39, 1  ;;  %v421_v42 = vld [vmem:[#allocation0 + $0xe7] ss:$-1 sm:$0xff]  ;;  %v426_v44 = vld [vmem:[#allocation0 + $0xef] ss:$-1 sm:$0xff]  ;;  %389 = vst.msk [vmem:[#allocation1 + $0x58] sm:$0xff] %vm234_vm0, %v385_v33 }
  0x2b   :  { %395 = vst [vmem:[#allocation1 + $0x60] sm:$0xff] %v394_v36  ;;  %v422_v45 = vrot.slane %v421_v42, 1  ;;  %v427_v46 = vrot.slane %v426_v44, 1  ;;  %v435_v47 = vld [vmem:[#allocation0 + $0xf7] ss:$-1 sm:$0xff]  ;;  %409 = vst [vmem:[#allocation1 + $0x68] sm:$0xff] %v408_v40 }
  0x2c   :  { %v440_v48 = vld [vmem:[#allocation0 + $0xff] ss:$-1 sm:$0xff]  ;;  %403 = vst.msk [vmem:[#allocation1 + $0x60] sm:$0xff] %vm234_vm0, %v399_v37  ;;  %v436_v49 = vrot.slane %v435_v47, 1  ;;  %v449_v51 = vld [vmem:[#allocation0 + $0x107] ss:$-1 sm:$0xff] }
  0x2d   :  { %v441_v50 = vrot.slane %v440_v48, 1  ;;  %v454_v52 = vld [vmem:[#allocation0 + $0x10f] ss:$-1 sm:$0xff]  ;;  %417 = vst.msk [vmem:[#allocation1 + $0x68] sm:$0xff] %vm234_vm0, %v413_v41  ;;  %423 = vst [vmem:[#allocation1 + $0x70] sm:$0xff] %v422_v45  ;;  %v450_v53 = vrot.slane %v449_v51, 1 }
  0x2e   :  { %v455_v54 = vrot.slane %v454_v52, 1  ;;  %v463_v55 = vld [vmem:[#allocation0 + $0x117] ss:$-1 sm:$0xff]  ;;  %v468_v56 = vld [vmem:[#allocation0 + $0x11f] ss:$-1 sm:$0xff]  ;;  %431 = vst.msk [vmem:[#allocation1 + $0x70] sm:$0xff] %vm234_vm0, %v427_v46 }
  0x2f   :  { %437 = vst [vmem:[#allocation1 + $0x78] sm:$0xff] %v436_v49  ;;  %v464_v57 = vrot.slane %v463_v55, 1  ;;  %v469_v58 = vrot.slane %v468_v56, 1  ;;  %v477_v59 = vld [vmem:[#allocation0 + $0x127] ss:$-1 sm:$0xff]  ;;  %451 = vst [vmem:[#allocation1 + $0x80] sm:$0xff] %v450_v53 }
  0x30   :  { %v482_v60 = vld [vmem:[#allocation0 + $0x12f] ss:$-1 sm:$0xff]  ;;  %445 = vst.msk [vmem:[#allocation1 + $0x78] sm:$0xff] %vm234_vm0, %v441_v50  ;;  %v478_v61 = vrot.slane %v477_v59, 1  ;;  %v491_v63 = vld [vmem:[#allocation0 + $0x137] ss:$-1 sm:$0xff] }
  0x31   :  { %v483_v62 = vrot.slane %v482_v60, 1  ;;  %v496_v0 = vld [vmem:[#allocation0 + $0x13f] ss:$-1 sm:$0xff]  ;;  %459 = vst.msk [vmem:[#allocation1 + $0x80] sm:$0xff] %vm234_vm0, %v455_v54  ;;  %465 = vst [vmem:[#allocation1 + $0x88] sm:$0xff] %v464_v57  ;;  %v492_v1 = vrot.slane %v491_v63, 1 }
  0x32   :  { %v497_v2 = vrot.slane %v496_v0, 1  ;;  %v505_v3 = vld [vmem:[#allocation0 + $0x147] ss:$-1 sm:$0xff]  ;;  %v510_v4 = vld [vmem:[#allocation0 + $0x14f] ss:$-1 sm:$0xff]  ;;  %473 = vst.msk [vmem:[#allocation1 + $0x88] sm:$0xff] %vm234_vm0, %v469_v58 }
  0x33   :  { %479 = vst [vmem:[#allocation1 + $0x90] sm:$0xff] %v478_v61  ;;  %v506_v5 = vrot.slane %v505_v3, 1  ;;  %v511_v6 = vrot.slane %v510_v4, 1  ;;  %v519_v7 = vld [vmem:[#allocation0 + $0x157] ss:$-1 sm:$0xff]  ;;  %493 = vst [vmem:[#allocation1 + $0x98] sm:$0xff] %v492_v1 }
  0x34   :  { %v524_v8 = vld [vmem:[#allocation0 + $0x15f] ss:$-1 sm:$0xff]  ;;  %487 = vst.msk [vmem:[#allocation1 + $0x90] sm:$0xff] %vm234_vm0, %v483_v62  ;;  %v520_v9 = vrot.slane %v519_v7, 1  ;;  %v533_v11 = vld [vmem:[#allocation0 + $0x167] ss:$-1 sm:$0xff] }
  0x35   :  { %v525_v10 = vrot.slane %v524_v8, 1  ;;  %v538_v12 = vld [vmem:[#allocation0 + $0x16f] ss:$-1 sm:$0xff]  ;;  %501 = vst.msk [vmem:[#allocation1 + $0x98] sm:$0xff] %vm234_vm0, %v497_v2  ;;  %507 = vst [vmem:[#allocation1 + $0xa0] sm:$0xff] %v506_v5  ;;  %v534_v13 = vrot.slane %v533_v11, 1 }
  0x36   :  { %v539_v14 = vrot.slane %v538_v12, 1  ;;  %v547_v15 = vld [vmem:[#allocation0 + $0x177] ss:$-1 sm:$0xff]  ;;  %v552_v16 = vld [vmem:[#allocation0 + $0x17f] ss:$-1 sm:$0xff]  ;;  %515 = vst.msk [vmem:[#allocation1 + $0xa0] sm:$0xff] %vm234_vm0, %v511_v6 }
  0x37   :  { %521 = vst [vmem:[#allocation1 + $0xa8] sm:$0xff] %v520_v9  ;;  %v548_v17 = vrot.slane %v547_v15, 1  ;;  %v553_v18 = vrot.slane %v552_v16, 1  ;;  %v561_v19 = vld [vmem:[#allocation0 + $0x187] ss:$-1 sm:$0xff]  ;;  %535 = vst [vmem:[#allocation1 + $0xb0] sm:$0xff] %v534_v13 }
  0x38   :  { %v566_v20 = vld [vmem:[#allocation0 + $0x18f] ss:$-1 sm:$0xff]  ;;  %529 = vst.msk [vmem:[#allocation1 + $0xa8] sm:$0xff] %vm234_vm0, %v525_v10  ;;  %v562_v21 = vrot.slane %v561_v19, 1  ;;  %v575_v23 = vld [vmem:[#allocation0 + $0x197] ss:$-1 sm:$0xff] }
  0x39   :  { %v567_v22 = vrot.slane %v566_v20, 1  ;;  %v580_v24 = vld [vmem:[#allocation0 + $0x19f] ss:$-1 sm:$0xff]  ;;  %543 = vst.msk [vmem:[#allocation1 + $0xb0] sm:$0xff] %vm234_vm0, %v539_v14  ;;  %549 = vst [vmem:[#allocation1 + $0xb8] sm:$0xff] %v548_v17  ;;  %v576_v25 = vrot.slane %v575_v23, 1 }
  0x3a   :  { %v581_v26 = vrot.slane %v580_v24, 1  ;;  %v589_v27 = vld [vmem:[#allocation0 + $0x1a7] ss:$-1 sm:$0xff]  ;;  %v594_v28 = vld [vmem:[#allocation0 + $0x1af] ss:$-1 sm:$0xff]  ;;  %557 = vst.msk [vmem:[#allocation1 + $0xb8] sm:$0xff] %vm234_vm0, %v553_v18 }
  0x3b   :  { %563 = vst [vmem:[#allocation1 + $0xc0] sm:$0xff] %v562_v21  ;;  %v590_v29 = vrot.slane %v589_v27, 1  ;;  %v595_v30 = vrot.slane %v594_v28, 1  ;;  %v603_v31 = vld [vmem:[#allocation0 + $0x1b7] ss:$-1 sm:$0xff]  ;;  %577 = vst [vmem:[#allocation1 + $0xc8] sm:$0xff] %v576_v25 }
  0x3c   :  { %v608_v32 = vld [vmem:[#allocation0 + $0x1bf] ss:$-1 sm:$0xff]  ;;  %571 = vst.msk [vmem:[#allocation1 + $0xc0] sm:$0xff] %vm234_vm0, %v567_v22  ;;  %v604_v33 = vrot.slane %v603_v31, 1  ;;  %v617_v35 = vld [vmem:[#allocation0 + $0x1c7] ss:$-1 sm:$0xff] }
  0x3d   :  { %v609_v34 = vrot.slane %v608_v32, 1  ;;  %v622_v36 = vld [vmem:[#allocation0 + $0x1cf] ss:$-1 sm:$0xff]  ;;  %585 = vst.msk [vmem:[#allocation1 + $0xc8] sm:$0xff] %vm234_vm0, %v581_v26  ;;  %591 = vst [vmem:[#allocation1 + $0xd0] sm:$0xff] %v590_v29  ;;  %v618_v37 = vrot.slane %v617_v35, 1 }
  0x3e   :  { %v623_v38 = vrot.slane %v622_v36, 1  ;;  %v631_v39 = vld [vmem:[#allocation0 + $0x1d7] ss:$-1 sm:$0xff]  ;;  %v636_v40 = vld [vmem:[#allocation0 + $0x1df] ss:$-1 sm:$0xff]  ;;  %599 = vst.msk [vmem:[#allocation1 + $0xd0] sm:$0xff] %vm234_vm0, %v595_v30 }
  0x3f   :  { %605 = vst [vmem:[#allocation1 + $0xd8] sm:$0xff] %v604_v33  ;;  %v632_v41 = vrot.slane %v631_v39, 1  ;;  %v637_v42 = vrot.slane %v636_v40, 1  ;;  %v645_v44 = vld [vmem:[#allocation0 + $0x1e7] ss:$-1 sm:$0xff]  ;;  %619 = vst [vmem:[#allocation1 + $0xe0] sm:$0xff] %v618_v37 }
  0x40   :  { %v650_v45 = vld [vmem:[#allocation0 + $0x1ef] ss:$-1 sm:$0xff]  ;;  %613 = vst.msk [vmem:[#allocation1 + $0xd8] sm:$0xff] %vm234_vm0, %v609_v34  ;;  %v646_v46 = vrot.slane %v645_v44, 1  ;;  %v659_v48 = vld [vmem:[#allocation0 + $0x1f7] ss:$-1 sm:$0xff] }
  0x41   :  { %v651_v47 = vrot.slane %v650_v45, 1  ;;  %v664_v49 = vld [vmem:[#allocation0 + $0x1ff] ss:$-1 sm:$0xff]  ;;  %627 = vst.msk [vmem:[#allocation1 + $0xe0] sm:$0xff] %vm234_vm0, %v623_v38  ;;  %633 = vst [vmem:[#allocation1 + $0xe8] sm:$0xff] %v632_v41  ;;  %v660_v50 = vrot.slane %v659_v48, 1 }
  0x42   :  { %v665_v51 = vrot.slane %v664_v49, 1  ;;  %v673_v52 = vld [vmem:[#allocation0 + $0x207] ss:$-1 sm:$0xff]  ;;  %v678_v53 = vld [vmem:[#allocation0 + $0x20f] ss:$-1 sm:$0xff]  ;;  %641 = vst.msk [vmem:[#allocation1 + $0xe8] sm:$0xff] %vm234_vm0, %v637_v42 }
  0x43   :  { %647 = vst [vmem:[#allocation1 + $0xf0] sm:$0xff] %v646_v46  ;;  %v674_v54 = vrot.slane %v673_v52, 1  ;;  %v679_v55 = vrot.slane %v678_v53, 1  ;;  %v687_v56 = vld [vmem:[#allocation0 + $0x217] ss:$-1 sm:$0xff]  ;;  %661 = vst [vmem:[#allocation1 + $0xf8] sm:$0xff] %v660_v50 }
  0x44   :  { %v692_v57 = vld [vmem:[#allocation0 + $0x21f] ss:$-1 sm:$0xff]  ;;  %655 = vst.msk [vmem:[#allocation1 + $0xf0] sm:$0xff] %vm234_vm0, %v651_v47  ;;  %v688_v58 = vrot.slane %v687_v56, 1  ;;  %v701_v60 = vld [vmem:[#allocation0 + $0x227] ss:$-1 sm:$0xff] }
  0x45   :  { %v693_v59 = vrot.slane %v692_v57, 1  ;;  %v706_v61 = vld [vmem:[#allocation0 + $0x22f] ss:$-1 sm:$0xff]  ;;  %669 = vst.msk [vmem:[#allocation1 + $0xf8] sm:$0xff] %vm234_vm0, %v665_v51  ;;  %675 = vst [vmem:[#allocation1 + $0x100] sm:$0xff] %v674_v54  ;;  %v702_v62 = vrot.slane %v701_v60, 1 }
  0x46   :  { %v707_v63 = vrot.slane %v706_v61, 1  ;;  %v715_v0 = vld [vmem:[#allocation0 + $0x237] ss:$-1 sm:$0xff]  ;;  %v720_v1 = vld [vmem:[#allocation0 + $0x23f] ss:$-1 sm:$0xff]  ;;  %683 = vst.msk [vmem:[#allocation1 + $0x100] sm:$0xff] %vm234_vm0, %v679_v55 }
  0x47   :  { %689 = vst [vmem:[#allocation1 + $0x108] sm:$0xff] %v688_v58  ;;  %v716_v2 = vrot.slane %v715_v0, 1  ;;  %v721_v3 = vrot.slane %v720_v1, 1  ;;  %v729_v4 = vld [vmem:[#allocation0 + $0x247] ss:$-1 sm:$0xff]  ;;  %703 = vst [vmem:[#allocation1 + $0x110] sm:$0xff] %v702_v62 }
  0x48   :  { %v734_v5 = vld [vmem:[#allocation0 + $0x24f] ss:$-1 sm:$0xff]  ;;  %697 = vst.msk [vmem:[#allocation1 + $0x108] sm:$0xff] %vm234_vm0, %v693_v59  ;;  %v730_v6 = vrot.slane %v729_v4, 1  ;;  %v743_v8 = vld [vmem:[#allocation0 + $0x257] ss:$-1 sm:$0xff] }
  0x49   :  { %v735_v7 = vrot.slane %v734_v5, 1  ;;  %v748_v9 = vld [vmem:[#allocation0 + $0x25f] ss:$-1 sm:$0xff]  ;;  %711 = vst.msk [vmem:[#allocation1 + $0x110] sm:$0xff] %vm234_vm0, %v707_v63  ;;  %717 = vst [vmem:[#allocation1 + $0x118] sm:$0xff] %v716_v2  ;;  %v744_v10 = vrot.slane %v743_v8, 1 }
  0x4a   :  { %v749_v11 = vrot.slane %v748_v9, 1  ;;  %v757_v12 = vld [vmem:[#allocation0 + $0x267] ss:$-1 sm:$0xff]  ;;  %v762_v13 = vld [vmem:[#allocation0 + $0x26f] ss:$-1 sm:$0xff]  ;;  %725 = vst.msk [vmem:[#allocation1 + $0x118] sm:$0xff] %vm234_vm0, %v721_v3 }
  0x4b   :  { %731 = vst [vmem:[#allocation1 + $0x120] sm:$0xff] %v730_v6  ;;  %v758_v14 = vrot.slane %v757_v12, 1  ;;  %v763_v15 = vrot.slane %v762_v13, 1  ;;  %v771_v16 = vld [vmem:[#allocation0 + $0x277] ss:$-1 sm:$0xff]  ;;  %745 = vst [vmem:[#allocation1 + $0x128] sm:$0xff] %v744_v10 }
  0x4c   :  { %v776_v17 = vld [vmem:[#allocation0 + $0x27f] ss:$-1 sm:$0xff]  ;;  %739 = vst.msk [vmem:[#allocation1 + $0x120] sm:$0xff] %vm234_vm0, %v735_v7  ;;  %v772_v18 = vrot.slane %v771_v16, 1  ;;  %v785_v20 = vld [vmem:[#allocation0 + $0x287] ss:$-1 sm:$0xff] }
  0x4d   :  { %v777_v19 = vrot.slane %v776_v17, 1  ;;  %v790_v21 = vld [vmem:[#allocation0 + $0x28f] ss:$-1 sm:$0xff]  ;;  %753 = vst.msk [vmem:[#allocation1 + $0x128] sm:$0xff] %vm234_vm0, %v749_v11  ;;  %759 = vst [vmem:[#allocation1 + $0x130] sm:$0xff] %v758_v14  ;;  %v786_v22 = vrot.slane %v785_v20, 1 }
  0x4e   :  { %v791_v23 = vrot.slane %v790_v21, 1  ;;  %v799_v24 = vld [vmem:[#allocation0 + $0x297] ss:$-1 sm:$0xff]  ;;  %v804_v25 = vld [vmem:[#allocation0 + $0x29f] ss:$-1 sm:$0xff]  ;;  %767 = vst.msk [vmem:[#allocation1 + $0x130] sm:$0xff] %vm234_vm0, %v763_v15 }
  0x4f   :  { %773 = vst [vmem:[#allocation1 + $0x138] sm:$0xff] %v772_v18  ;;  %v800_v26 = vrot.slane %v799_v24, 1  ;;  %v805_v27 = vrot.slane %v804_v25, 1  ;;  %v813_v28 = vld [vmem:[#allocation0 + $0x2a7] ss:$-1 sm:$0xff]  ;;  %787 = vst [vmem:[#allocation1 + $0x140] sm:$0xff] %v786_v22 }
  0x50   :  { %v818_v29 = vld [vmem:[#allocation0 + $0x2af] ss:$-1 sm:$0xff]  ;;  %781 = vst.msk [vmem:[#allocation1 + $0x138] sm:$0xff] %vm234_vm0, %v777_v19  ;;  %v814_v30 = vrot.slane %v813_v28, 1  ;;  %v827_v32 = vld [vmem:[#allocation0 + $0x2b7] ss:$-1 sm:$0xff] }
  0x51   :  { %v819_v31 = vrot.slane %v818_v29, 1  ;;  %v832_v33 = vld [vmem:[#allocation0 + $0x2bf] ss:$-1 sm:$0xff]  ;;  %795 = vst.msk [vmem:[#allocation1 + $0x140] sm:$0xff] %vm234_vm0, %v791_v23  ;;  %801 = vst [vmem:[#allocation1 + $0x148] sm:$0xff] %v800_v26  ;;  %v828_v34 = vrot.slane %v827_v32, 1 }
  0x52   :  { %v833_v35 = vrot.slane %v832_v33, 1  ;;  %v841_v36 = vld [vmem:[#allocation0 + $0x2c7] ss:$-1 sm:$0xff]  ;;  %v846_v37 = vld [vmem:[#allocation0 + $0x2cf] ss:$-1 sm:$0xff]  ;;  %809 = vst.msk [vmem:[#allocation1 + $0x148] sm:$0xff] %vm234_vm0, %v805_v27 }
  0x53   :  { %815 = vst [vmem:[#allocation1 + $0x150] sm:$0xff] %v814_v30  ;;  %v842_v38 = vrot.slane %v841_v36, 1  ;;  %v847_v39 = vrot.slane %v846_v37, 1  ;;  %v855_v40 = vld [vmem:[#allocation0 + $0x2d7] ss:$-1 sm:$0xff]  ;;  %829 = vst [vmem:[#allocation1 + $0x158] sm:$0xff] %v828_v34 }
  0x54   :  { %v860_v41 = vld [vmem:[#allocation0 + $0x2df] ss:$-1 sm:$0xff]  ;;  %823 = vst.msk [vmem:[#allocation1 + $0x150] sm:$0xff] %vm234_vm0, %v819_v31  ;;  %v856_v42 = vrot.slane %v855_v40, 1  ;;  %v869_v45 = vld [vmem:[#allocation0 + $0x2e7] ss:$-1 sm:$0xff] }
  0x55   :  { %v861_v44 = vrot.slane %v860_v41, 1  ;;  %v874_v46 = vld [vmem:[#allocation0 + $0x2ef] ss:$-1 sm:$0xff]  ;;  %837 = vst.msk [vmem:[#allocation1 + $0x158] sm:$0xff] %vm234_vm0, %v833_v35  ;;  %843 = vst [vmem:[#allocation1 + $0x160] sm:$0xff] %v842_v38  ;;  %v870_v47 = vrot.slane %v869_v45, 1 }
  0x56   :  { %v875_v48 = vrot.slane %v874_v46, 1  ;;  %v883_v49 = vld [vmem:[#allocation0 + $0x2f7] ss:$-1 sm:$0xff]  ;;  %v888_v50 = vld [vmem:[#allocation0 + $0x2ff] ss:$-1 sm:$0xff]  ;;  %851 = vst.msk [vmem:[#allocation1 + $0x160] sm:$0xff] %vm234_vm0, %v847_v39 }
  0x57   :  { %857 = vst [vmem:[#allocation1 + $0x168] sm:$0xff] %v856_v42  ;;  %v884_v51 = vrot.slane %v883_v49, 1  ;;  %v889_v52 = vrot.slane %v888_v50, 1  ;;  %v1016_v53 = vld [vmem:[#allocation1] sm:$0xff]  ;;  %v1018_v54 = vld [vmem:[#allocation1 + $0x8] sm:$0xff]  ;;  %v1020_v55 = vld [vmem:[#allocation1 + $0x10] sm:$0xff] }
  0x58   :  { %865 = vst.msk [vmem:[#allocation1 + $0x168] sm:$0xff] %vm234_vm0, %v861_v44  ;;  %871 = vst [vmem:[#allocation1 + $0x170] sm:$0xff] %v870_v47  ;;  %v1022_v56 = vld [vmem:[#allocation1 + $0x18] sm:$0xff]  ;;  %v1024_v57 = vld [vmem:[#allocation1 + $0x20] sm:$0xff] }
  0x59   :  { %1017 = vst [vmem:[%s1663_s1] sm:$0xff] %v1016_v53  ;;  %1019 = vst [vmem:[%s1663_s1 + $0x8] sm:$0xff] %v1018_v54  ;;  %v1026_v58 = vld [vmem:[#allocation1 + $0x28] sm:$0xff]  ;;  %v1028_v59 = vld [vmem:[#allocation1 + $0x30] sm:$0xff] }
  0x5a   :  { %1021 = vst [vmem:[%s1663_s1 + $0x10] sm:$0xff] %v1020_v55  ;;  %879 = vst.msk [vmem:[#allocation1 + $0x170] sm:$0xff] %vm234_vm0, %v875_v48  ;;  %v1030_v60 = vld [vmem:[#allocation1 + $0x38] sm:$0xff]  ;;  %v1032_v61 = vld [vmem:[#allocation1 + $0x40] sm:$0xff] }
  0x5b   :  { %885 = vst [vmem:[#allocation1 + $0x178] sm:$0xff] %v884_v51  ;;  %1023 = vst [vmem:[%s1663_s1 + $0x18] sm:$0xff] %v1022_v56  ;;  %v1034_v43 = vld [vmem:[#allocation1 + $0x48] sm:$0xff]  ;;  %v1036_v62 = vld [vmem:[#allocation1 + $0x50] sm:$0xff] }
  0x5c   :  { %1025 = vst [vmem:[%s1663_s1 + $0x20] sm:$0xff] %v1024_v57  ;;  %1027 = vst [vmem:[%s1663_s1 + $0x28] sm:$0xff] %v1026_v58  ;;  %v1038_v63 = vld [vmem:[#allocation1 + $0x58] sm:$0xff]  ;;  %v1040_v0 = vld [vmem:[#allocation1 + $0x60] sm:$0xff] }
  0x5d   :  { %893 = vst.msk [vmem:[#allocation1 + $0x178] sm:$0xff] %vm234_vm0, %v889_v52  ;;  %1029 = vst [vmem:[%s1663_s1 + $0x30] sm:$0xff] %v1028_v59  ;;  %v1042_v1 = vld [vmem:[#allocation1 + $0x68] sm:$0xff]  ;;  %v1044_v2 = vld [vmem:[#allocation1 + $0x70] sm:$0xff] }
  0x5e   :  { %1031 = vst [vmem:[%s1663_s1 + $0x38] sm:$0xff] %v1030_v60  ;;  %1033 = vst [vmem:[%s1663_s1 + $0x40] sm:$0xff] %v1032_v61  ;;  %v1046_v3 = vld [vmem:[#allocation1 + $0x78] sm:$0xff]  ;;  %v1048_v4 = vld [vmem:[#allocation1 + $0x80] sm:$0xff] }
  0x5f   :  { %1035 = vst [vmem:[%s1663_s1 + $0x48] sm:$0xff] %v1034_v43  ;;  %1037 = vst [vmem:[%s1663_s1 + $0x50] sm:$0xff] %v1036_v62  ;;  %v1050_v5 = vld [vmem:[#allocation1 + $0x88] sm:$0xff]  ;;  %v1052_v6 = vld [vmem:[#allocation1 + $0x90] sm:$0xff] }
  0x60   :  { %1039 = vst [vmem:[%s1663_s1 + $0x58] sm:$0xff] %v1038_v63  ;;  %1041 = vst [vmem:[%s1663_s1 + $0x60] sm:$0xff] %v1040_v0  ;;  %v1054_v7 = vld [vmem:[#allocation1 + $0x98] sm:$0xff]  ;;  %v1056_v8 = vld [vmem:[#allocation1 + $0xa0] sm:$0xff] }
  0x61   :  { %1043 = vst [vmem:[%s1663_s1 + $0x68] sm:$0xff] %v1042_v1  ;;  %1045 = vst [vmem:[%s1663_s1 + $0x70] sm:$0xff] %v1044_v2  ;;  %v1058_v9 = vld [vmem:[#allocation1 + $0xa8] sm:$0xff]  ;;  %v1060_v10 = vld [vmem:[#allocation1 + $0xb0] sm:$0xff] }
  0x62   :  { %1047 = vst [vmem:[%s1663_s1 + $0x78] sm:$0xff] %v1046_v3  ;;  %1049 = vst [vmem:[%s1663_s1 + $0x80] sm:$0xff] %v1048_v4  ;;  %v1062_v11 = vld [vmem:[#allocation1 + $0xb8] sm:$0xff]  ;;  %v1064_v12 = vld [vmem:[#allocation1 + $0xc0] sm:$0xff] }
  0x63   :  { %1051 = vst [vmem:[%s1663_s1 + $0x88] sm:$0xff] %v1050_v5  ;;  %1053 = vst [vmem:[%s1663_s1 + $0x90] sm:$0xff] %v1052_v6  ;;  %v1066_v13 = vld [vmem:[#allocation1 + $0xc8] sm:$0xff]  ;;  %v1068_v14 = vld [vmem:[#allocation1 + $0xd0] sm:$0xff] }
  0x64   :  { %1055 = vst [vmem:[%s1663_s1 + $0x98] sm:$0xff] %v1054_v7  ;;  %1057 = vst [vmem:[%s1663_s1 + $0xa0] sm:$0xff] %v1056_v8  ;;  %v1070_v15 = vld [vmem:[#allocation1 + $0xd8] sm:$0xff]  ;;  %v1072_v16 = vld [vmem:[#allocation1 + $0xe0] sm:$0xff] }
  0x65   :  { %1059 = vst [vmem:[%s1663_s1 + $0xa8] sm:$0xff] %v1058_v9  ;;  %1061 = vst [vmem:[%s1663_s1 + $0xb0] sm:$0xff] %v1060_v10  ;;  %v1074_v17 = vld [vmem:[#allocation1 + $0xe8] sm:$0xff]  ;;  %v1076_v18 = vld [vmem:[#allocation1 + $0xf0] sm:$0xff] }
  0x66   :  { %1063 = vst [vmem:[%s1663_s1 + $0xb8] sm:$0xff] %v1062_v11  ;;  %1065 = vst [vmem:[%s1663_s1 + $0xc0] sm:$0xff] %v1064_v12  ;;  %v1078_v19 = vld [vmem:[#allocation1 + $0xf8] sm:$0xff]  ;;  %v1080_v20 = vld [vmem:[#allocation1 + $0x100] sm:$0xff] }
  0x67   :  { %1067 = vst [vmem:[%s1663_s1 + $0xc8] sm:$0xff] %v1066_v13  ;;  %1069 = vst [vmem:[%s1663_s1 + $0xd0] sm:$0xff] %v1068_v14  ;;  %v1082_v21 = vld [vmem:[#allocation1 + $0x108] sm:$0xff]  ;;  %v1084_v22 = vld [vmem:[#allocation1 + $0x110] sm:$0xff] }
  0x68   :  { %1071 = vst [vmem:[%s1663_s1 + $0xd8] sm:$0xff] %v1070_v15  ;;  %1073 = vst [vmem:[%s1663_s1 + $0xe0] sm:$0xff] %v1072_v16  ;;  %v1086_v23 = vld [vmem:[#allocation1 + $0x118] sm:$0xff]  ;;  %v1088_v24 = vld [vmem:[#allocation1 + $0x120] sm:$0xff] }
  0x69   :  { %1075 = vst [vmem:[%s1663_s1 + $0xe8] sm:$0xff] %v1074_v17  ;;  %1077 = vst [vmem:[%s1663_s1 + $0xf0] sm:$0xff] %v1076_v18  ;;  %v1090_v25 = vld [vmem:[#allocation1 + $0x128] sm:$0xff]  ;;  %v1092_v26 = vld [vmem:[#allocation1 + $0x130] sm:$0xff] }
  0x6a   :  { %1079 = vst [vmem:[%s1663_s1 + $0xf8] sm:$0xff] %v1078_v19  ;;  %1081 = vst [vmem:[%s1663_s1 + $0x100] sm:$0xff] %v1080_v20  ;;  %v1094_v27 = vld [vmem:[#allocation1 + $0x138] sm:$0xff]  ;;  %v1096_v28 = vld [vmem:[#allocation1 + $0x140] sm:$0xff] }
  0x6b   :  { %1083 = vst [vmem:[%s1663_s1 + $0x108] sm:$0xff] %v1082_v21  ;;  %1085 = vst [vmem:[%s1663_s1 + $0x110] sm:$0xff] %v1084_v22  ;;  %v1098_v29 = vld [vmem:[#allocation1 + $0x148] sm:$0xff]  ;;  %v1100_v30 = vld [vmem:[#allocation1 + $0x150] sm:$0xff] }
  0x6c   :  { %1087 = vst [vmem:[%s1663_s1 + $0x118] sm:$0xff] %v1086_v23  ;;  %1089 = vst [vmem:[%s1663_s1 + $0x120] sm:$0xff] %v1088_v24  ;;  %v1102_v31 = vld [vmem:[#allocation1 + $0x158] sm:$0xff]  ;;  %v1104_v32 = vld [vmem:[#allocation1 + $0x160] sm:$0xff] }
  0x6d   :  { %1091 = vst [vmem:[%s1663_s1 + $0x128] sm:$0xff] %v1090_v25  ;;  %1093 = vst [vmem:[%s1663_s1 + $0x130] sm:$0xff] %v1092_v26  ;;  %v1106_v33 = vld [vmem:[#allocation1 + $0x168] sm:$0xff]  ;;  %v1108_v34 = vld [vmem:[#allocation1 + $0x170] sm:$0xff] }
  0x6e   :  { %1095 = vst [vmem:[%s1663_s1 + $0x138] sm:$0xff] %v1094_v27  ;;  %1097 = vst [vmem:[%s1663_s1 + $0x140] sm:$0xff] %v1096_v28  ;;  %v1110_v35 = vld [vmem:[#allocation1 + $0x178] sm:$0xff] }
  0x6f   :  { %1099 = vst [vmem:[%s1663_s1 + $0x148] sm:$0xff] %v1098_v29  ;;  %1101 = vst [vmem:[%s1663_s1 + $0x150] sm:$0xff] %v1100_v30 }
  0x70   :  { %1103 = vst [vmem:[%s1663_s1 + $0x158] sm:$0xff] %v1102_v31  ;;  %1105 = vst [vmem:[%s1663_s1 + $0x160] sm:$0xff] %v1104_v32 }
  0x71   :  { %1107 = vst [vmem:[%s1663_s1 + $0x168] sm:$0xff] %v1106_v33  ;;  %1109 = vst [vmem:[%s1663_s1 + $0x170] sm:$0xff] %v1108_v34 }
  0x72   :  { %1111 = vst [vmem:[%s1663_s1 + $0x178] sm:$0xff] %v1110_v35 }

// kernel: _lambda_.3
= control target key start
LH: loop header
LB: loop body
LE: loop exit
PB: predicated region body
PF: predicated region fallthrough
CT: control target
= control target key end

     0   :  { %s1361_s18 = smov 0   ;;  %s1460_s0 = inlined_call_operand.vmem [shape: f32[2,8,768], index: 0, kind: input, shape index: {}]   ;;  %s1461_s1 = inlined_call_operand.vmem [shape: f32[2,8,768], index: 1, kind: input, shape index: {}]   ;;  %s1462_s2 = inlined_call_operand.vmem [shape: f32[2,2,768], index: 2, kind: input, shape index: {}]   ;;  %s1463_s3 = inlined_call_operand.vmem [shape: f32[4,8,8], index: 3, kind: input, shape index: {}]   ;;  %s1464_s4 = inlined_call_operand.vmem [shape: f32[3,8,1], index: 4, kind: input, shape index: {}]   ;;  %s1465_s5 = inlined_call_operand.vmem [shape: f32[2,8,768], index: 5, kind: output, shape index: {}]  }
   0x1 LB: > { %s1255_s19 = sadd.s32 4294967295, %s1326_s18   ;;  %p1259_p0 = scmp.ge.s32.totalorder %s1326_s18, 1  ;;  %s1326_s18 = sphi %s1361_s18, %s15_s18  }
   0x2   : > { %p207_p1 = scmp.lt.s32.totalorder %s1326_s18, 3 }
   0x4   : > { %p208_p2 = pnand %p1259_p0, %p207_p1 }
   0x5   : > { %p245_p3 = scmp.lt.s32.totalorder (!%p208_p2), %s1255_s19, 1 }
   0x6   : > { %211 = sbr.rel (%p208_p2) target bundleno = 468 (0x1d4), region = 40 }
   0xb   : > { %v272_v0 = vld [vmem:[%s1464_s4] sm:$0xff]  ;;  %v1328_v1 = vmov 0.0   ;;  %s1467_s19 = smov (!%p245_p3, %s1255_s19), 1  ;;  %v1329_v2 = vmov 0   ;;  %v1268_v3 = vld [vmem:[%s1464_s4 + $0x8] sm:$0xff]  ;;  %vm278_vm0 = vcmask 64512  }
   0xc   : > { %346 = vmatprep.mubr.f32.mxu0 %v1328_v1  ;;  %417 = vmatprep.mubr.f32.mxu1 %v1328_v1  ;;  %s1377_s22 = smul.u32 48, %s1467_s19  ;;  %v271_v4 = vld [vmem:[%s1463_s3] sm:$0xff]  ;;  %v1277_v11 = vld [vmem:[%s1464_s4 + $0x10] sm:$0xff]  ;;  %v1276_v12 = vld [vmem:[%s1463_s3 + $0x18] sm:$0xff]  ;;  %v1330_v13 = vmov 1  }
   0xd   : > { %1293 = vset.pattern.permute.xlu0 %v1329_v2  ;;  %1294 = vset.pattern.permute.xlu1 %v1329_v2  ;;  %v1267_v52 = vld [vmem:[%s1463_s3 + $0x8] sm:$0xff]  ;;  %v1272_v60 = vld [vmem:[%s1463_s3 + $0x10] sm:$0xff]  ;;  %v985_v2 = vlaneseq  ;;  %s1281_s16 = smul.u32 12, %s1467_s19 }
   0xe   : > { %275 = vperm.xlu0 %1293, %v272_v0   ;;  %s249_s27 = scalar_lea.vmem %s1460_s0, %s1377_s22  ;;  %980 = vperm.xlu1 %1294, %v1276_v12   ;;  %s254_s11 = scalar_lea.vmem %s1461_s1, %s1377_s22 }
   0xf   : > { %v266_v5 = vld [vmem:[%s249_s27 + $0x8] sm:$0xff]  ;;  %v268_v6 = vld [vmem:[%s249_s27 + $0x18] sm:$0xff]  ;;  %v265_v7 = vld [vmem:[%s249_s27] sm:$0xff]  ;;  %s259_s21 = scalar_lea.vmem %s1462_s2, %s1281_s16  ;;  %s264_s24 = scalar_lea.vmem %s1465_s5, %s1377_s22 }
  0x10   : > { %312 = vmatprep.subr.mxu0 %v266_v5  ;;  %383 = vmatprep.subr.mxu1 %v268_v6  ;;  %v267_v8 = vld [vmem:[%s249_s27 + $0x10] sm:$0xff]  ;;  %v270_v9 = vld [vmem:[%s249_s27 + $0x28] sm:$0xff]  ;;  %v269_v10 = vld [vmem:[%s249_s27 + $0x20] sm:$0xff] }
  0x11   : > { %313 = vmatpush1.msra.mxu0 %v265_v7  ;;  %384 = vmatpush1.msra.mxu1 %v267_v8  ;;  %v753_v57 = vld [vmem:[%s254_s11 + $0x8] sm:$0xff]  ;;  %v752_v59 = vld [vmem:[%s254_s11] sm:$0xff]  ;;  %v755_v61 = vld [vmem:[%s254_s11 + $0x18] sm:$0xff] }
  0x12   : > { %531 = vperm.xlu0 %1293, %v1268_v3   ;;  %1264 = vmatmul.mubr.msk.f32.vlgmr.msra.gmra.mxu0 %vm278_vm0, %v271_v4  ;;  %v757_v62 = vld [vmem:[%s254_s11 + $0x28] sm:$0xff]  ;;  %v754_v63 = vld [vmem:[%s254_s11 + $0x10] sm:$0xff]  ;;  %v756_v0 = vld [vmem:[%s254_s11 + $0x20] sm:$0xff]  ;;  %v986_v3 = vshrl.u32 %v985_v2, 7 }
  0x13   : > { %1265 = vmatmul.mubr.msk.f32.vlgmr.msra.gmra.mxu1 %vm278_vm0, %v271_v4  ;;  %454 = vmatprep.subr.mxu0 %v270_v9  ;;  %v974_v6 = vld [vmem:[%s259_s21] sm:$0xff] }
  0x14   : > { %488 = vmatprep.mubr.f32.mxu0 %v1328_v1  ;;  %455 = vmatpush1.msra.mxu0 %v269_v10  ;;  %v1427_v5 = vsub.s32 1, %v986_v3  ;;  %v991_v7 = vsub.s32 2, %v986_v3  ;;  %v1055_v8 = vsub.s32 3, %v986_v3 }
  0x15   : > { %601 = vmatprep.mubr.f32.mxu1 %v1328_v1  ;;  %1295 = vset.pattern.permute.xlu1 %v1330_v13 }
  0x16   : > { %1131 = vperm.xlu0 %1293, %v1277_v11   ;;  %1266 = vmatmul.mubr.msk.f32.vlgmr.msra.gmra.mxu0 %vm278_vm0, %v271_v4  ;;  %v1425_v4 = vsub.s32 0, %v986_v3  ;;  %v1052_v10 = vrot.slane %v974_v6, %v1427_v5  ;;  %v995_v11 = vsub.s32 4, %v986_v3  ;;  %v992_v13 = vrot.slane %v974_v6, %v991_v7 }
  0x17   : > { %672 = vmatprep.mubr.f32.mxu0 %v1328_v1  ;;  %1046 = vperm.xlu1 %1295, %v1276_v12   ;;  %v1059_v12 = vsub.s32 5, %v986_v3 }
  0x89   : > { %v276_v14 = vpop.permute.xlu0 %275  ;;  %v1429_v9 = vpop.permute.xlu1 %980 }
  0xd2   : > { %v348_v15 = vpop.f32.mrf.mxu0 }
  0xd3   : > { %v419_v16 = vpop.f32.mrf.mxu1  ;;  %v349_v17 = vadd.f32 %v348_v15, %v276_v14  ;;  %v975_v15 = vld [vmem:[%s259_s21 + $0x8] sm:$0xf] }
  0xd4   : > { %v420_v18 = vadd.f32 %v419_v16, %v276_v14  ;;  %v350_v19 = vpop.f32.mrf.mxu0  ;;  %v999_v16 = vsub.s32 6, %v986_v3 }
  0xd5   : > { %v421_v20 = vpop.f32.mrf.mxu1  ;;  %v501_v21 = vmul.f32 0.70710677, %v349_v17  ;;  %v351_v23 = vadd.f32 %v350_v19, %v276_v14  ;;  %v495_v42 = vmul.f32 0.5, %v349_v17  ;;  %v1063_v17 = vsub.s32 7, %v986_v3 }
  0xd6   : > { %v503_v22 = vmul.f32 0.70710677, %v420_v18  ;;  %v422_v24 = vadd.f32 %v421_v20, %v276_v14  ;;  %v490_v25 = vpop.f32.mrf.mxu0  ;;  %v497_v46 = vmul.f32 0.5, %v420_v18  ;;  %v1082_v19 = vrot.slane %v1052_v10, %v1427_v5 }
  0xd7   : > { %1296 = verf.f32 %v501_v21  ;;  %v491_v26 = vadd.f32 %v490_v25, %v276_v14  ;;  %v502_v27 = vmul.f32 0.70710677, %v351_v23  ;;  %v496_v39 = vmul.f32 0.5, %v351_v23 }
  0xd8   : > { %1298 = verf.f32 %v503_v22  ;;  %v492_v28 = vpop.f32.mrf.mxu0  ;;  %v504_v29 = vmul.f32 0.70710677, %v422_v24  ;;  %v498_v43 = vmul.f32 0.5, %v422_v24  ;;  %v996_v20 = vrot.slane %v974_v6, %v995_v11  ;;  %v1047_v22 = vpop.permute.xlu1 %1046 }
  0xd9   : > { %v505_v30 = vmul.f32 0.70710677, %v491_v26  ;;  %v493_v31 = vadd.f32 %v492_v28, %v276_v14  ;;  %1300 = verf.f32 %v502_v27  ;;  %v499_v55 = vmul.f32 0.5, %v491_v26 }
  0xda   : > { %1302 = verf.f32 %v504_v29  ;;  %v1056_v14 = vrot.slane %v974_v6, %v1055_v8  ;;  %v1060_v21 = vrot.slane %v974_v6, %v1059_v12  ;;  %v1004_v23 = vrot.slane %v975_v15, %v1425_v4 }
  0xdb   : > { %v506_v32 = vmul.f32 0.70710677, %v493_v31  ;;  %1304 = verf.f32 %v505_v30  ;;  %v500_v50 = vmul.f32 0.5, %v493_v31  ;;  %v1022_v24 = vrot.slane %v992_v13, %v1425_v4 }
  0xdc   : > { %v1086_v25 = vrot.slane %v1056_v14, %v1427_v5  ;;  %v1068_v26 = vrot.slane %v975_v15, %v1427_v5  ;;  %v1000_v27 = vrot.slane %v974_v6, %v999_v16  ;;  %v1064_v28 = vrot.slane %v974_v6, %v1063_v17 }
  0xdd   : > { %1306 = verf.f32 %v506_v32  ;;  %v1103_v31 = vmul.f32 %v1082_v19, %v1047_v22  ;;  %v1026_v32 = vrot.slane %v996_v20, %v1425_v4 }
  0xe4   : > { %v1297_v33 = vpop.eup %1296 }
  0xe5   : > { %v1299_v34 = vpop.eup %1298  ;;  %v513_v36 = vadd.f32 1.0, %v1297_v33  ;;  %v1090_v33 = vrot.slane %v1060_v21, %v1427_v5 }
  0xe6   : > { %v1301_v35 = vpop.eup %1300  ;;  %v515_v38 = vadd.f32 1.0, %v1299_v34 }
  0xe7   : > { %v1303_v37 = vpop.eup %1302  ;;  %v514_v40 = vadd.f32 1.0, %v1301_v35  ;;  %v519_v49 = vmul.f32 %v513_v36, %v495_v42  ;;  %v1034_v35 = vrot.slane %v1004_v23, %v1425_v4  ;;  %v1008_v36 = vrot.slane %v975_v15, %v991_v7  ;;  %v532_v42 = vpop.permute.xlu0 %531 }
  0xe8   : > { %v1305_v41 = vpop.eup %1304  ;;  %v516_v44 = vadd.f32 1.0, %v1303_v37  ;;  %v521_v54 = vmul.f32 %v515_v38, %v497_v46  ;;  %v1072_v37 = vrot.slane %v975_v15, %v1055_v8 }
  0xe9   : > { %v517_v47 = vadd.f32 1.0, %v1305_v41  ;;  %v520_v48 = vmul.f32 %v514_v40, %v496_v39  ;;  %v1040_v39 = vmul.f32 %v1022_v24, %v1429_v9  ;;  %v1104_v40 = vmul.f32 %v1086_v25, %v1047_v22 }
  0xea   : > { %v1307_v45 = vpop.eup %1306  ;;  %v522_v51 = vmul.f32 %v516_v44, %v498_v43  ;;  %v1098_v41 = vrot.slane %v1068_v26, %v1427_v5  ;;  %v1030_v44 = vrot.slane %v1000_v27, %v1425_v4 }
  0xeb   : > { %v518_v53 = vadd.f32 1.0, %v1307_v45  ;;  %567 = vmatprep.subr.mxu1 %v520_v48  ;;  %v523_v58 = vmul.f32 %v517_v47, %v499_v55  ;;  %v1094_v45 = vrot.slane %v1064_v28, %v1427_v5  ;;  %v1132_v8 = vpop.permute.xlu0 %1131 }
  0xec   : > { %638 = vmatprep.subr.mxu0 %v522_v51  ;;  %568 = vmatpush1.msra.mxu1 %v519_v49  ;;  %v1041_v49 = vmul.f32 %v1026_v32, %v1429_v9 }
  0xed   : > { %v524_v56 = vmul.f32 %v518_v53, %v500_v50  ;;  %639 = vmatpush1.msra.mxu0 %v521_v54  ;;  %1269 = vmatmul.mubr.msk.f32.vlgmr.msra.gmra.mxu1 %vm278_vm0, %v1267_v52  ;;  %v1105_v50 = vmul.f32 %v1090_v33, %v1047_v22  ;;  %v1038_v53 = vrot.slane %v1008_v36, %v1425_v4 }
  0xee   : > { %1270 = vmatmul.mubr.msk.f32.vlgmr.msra.gmra.mxu0 %vm278_vm0, %v1267_v52  ;;  %791 = vmatprep.subr.mxu0 %v753_v57  ;;  %v1102_v54 = vrot.slane %v1072_v37, %v1427_v5 }
  0xef   : > { %709 = vmatprep.subr.mxu1 %v524_v56  ;;  %743 = vmatprep.mubr.f32.mxu1 %v1328_v1  ;;  %v1111_v7 = vadd.f32 %v1105_v50, %v1041_v49  ;;  %v1044_v5 = vmul.f32 %v1038_v53, %v1429_v9 }
  0xf0   : > { %710 = vmatpush1.msra.mxu1 %v523_v58  ;;  %792 = vmatpush1.msra.mxu0 %v752_v59  ;;  %v1110_v58 = vadd.f32 %v1104_v40, %v1040_v39  ;;  %v1107_v59 = vmul.f32 %v1098_v41, %v1047_v22  ;;  %v1108_v11 = vmul.f32 %v1102_v54, %v1047_v22 }
  0xf1   : > { %825 = vmatprep.mubr.f32.mxu0 %v1328_v1  ;;  %1271 = vmatmul.mubr.msk.f32.vlgmr.msra.gmra.mxu1 %vm278_vm0, %v1267_v52  ;;  %v1043_v52 = vmul.f32 %v1034_v35, %v1429_v9 }
  0xf2   : > { %1273 = vmatmul.mubr.msk.f32.vlgmr.msra.gmra.mxu0 %vm278_vm0, %v1272_v60  ;;  %862 = vmatprep.subr.mxu1 %v755_v61  ;;  %v1114_v28 = vadd.f32 %v1108_v11, %v1044_v5 }
  0xf3   : > { %933 = vmatprep.subr.mxu0 %v757_v62  ;;  %863 = vmatpush1.msra.mxu1 %v754_v63  ;;  %v1042_v62 = vmul.f32 %v1030_v44, %v1429_v9  ;;  %v1106_v63 = vmul.f32 %v1094_v45, %v1047_v22  ;;  %v1113_v14 = vadd.f32 %v1107_v59, %v1043_v52 }
  0xf4   : > { %896 = vmatprep.mubr.f32.mxu1 %v1328_v1  ;;  %934 = vmatpush1.msra.mxu0 %v756_v0 }
  0xf5   : > { %967 = vmatprep.mubr.f32.mxu0 %v1328_v1  ;;  %1274 = vmatmul.mubr.msk.f32.vlgmr.msra.gmra.mxu1 %vm278_vm0, %v1272_v60  ;;  %v988_v1 = vrot.slane %v974_v6, %v1425_v4  ;;  %v1112_v19 = vadd.f32 %v1106_v63, %v1042_v62 }
  0xf6   : > { %1275 = vmatmul.mubr.msk.f32.vlgmr.msra.gmra.mxu0 %vm278_vm0, %v1272_v60 }
  0xf7   : > { %v1018_v18 = vrot.slane %v988_v1, %v1425_v4 }
  0xf9   : > { %v1039_v30 = vmul.f32 %v1018_v18, %v1429_v9 }
  0xfb   : > { %v1109_v48 = vadd.f32 %v1103_v31, %v1039_v30 }
 0x1ad   : > { %v603_v29 = vpop.f32.mrf.mxu1 }
 0x1ae   : > { %v674_v34 = vpop.f32.mrf.mxu0  ;;  %v604_v46 = vadd.f32 %v603_v29, %v532_v42 }
 0x1af   : > { %v605_v38 = vpop.f32.mrf.mxu1  ;;  %v675_v60 = vadd.f32 %v674_v34, %v532_v42 }
 0x1b0   : > { %v676_v43 = vpop.f32.mrf.mxu0  ;;  %v606_v55 = vadd.f32 %v605_v38, %v532_v42 }
 0x1b1   : > { %v745_v47 = vpop.f32.mrf.mxu1  ;;  %v677_v1 = vadd.f32 %v676_v43, %v532_v42 }
 0x1b2   : > { %v827_v51 = vpop.f32.mrf.mxu0  ;;  %v746_v0 = vadd.f32 %v745_v47, %v532_v42 }
 0x1b3   : > { %v1115_v56 = vadd.f32 %v827_v51, %v604_v46  ;;  %v747_v57 = vpop.f32.mrf.mxu1 }
 0x1b4   : > { %v829_v61 = vpop.f32.mrf.mxu0  ;;  %v748_v17 = vadd.f32 %v747_v57, %v532_v42 }
 0x1b5   : > { %v1121_v2 = vadd.f32 %v1115_v56, %v1109_v48  ;;  %v1116_v3 = vadd.f32 %v829_v61, %v606_v55  ;;  %v898_v6 = vpop.f32.mrf.mxu1 }
 0x1b6   : > { %v1117_v4 = vadd.f32 %v898_v6, %v675_v60  ;;  %v969_v10 = vpop.f32.mrf.mxu0 }
 0x1b7   : > { %v1134_v12 = vadd.f32 %v1132_v8, %v1121_v2  ;;  %v1122_v13 = vadd.f32 %v1116_v3, %v1110_v58  ;;  %v1119_v15 = vadd.f32 %v969_v10, %v746_v0  ;;  %v900_v16 = vpop.f32.mrf.mxu1 }
 0x1b8   : > { %v1123_v18 = vadd.f32 %v1117_v4, %v1111_v7  ;;  %v1118_v20 = vadd.f32 %v900_v16, %v677_v1  ;;  %v971_v21 = vpop.f32.mrf.mxu0 }
 0x1b9   : > { %v1146_v23 = vmul.f32 0.70710677, %v1134_v12  ;;  %v1135_v24 = vadd.f32 %v1132_v8, %v1122_v13  ;;  %v1125_v25 = vadd.f32 %v1119_v15, %v1113_v14  ;;  %v1120_v29 = vadd.f32 %v971_v21, %v748_v17 }
 0x1ba   : > { %v1136_v26 = vadd.f32 %v1132_v8, %v1123_v18  ;;  %v1124_v27 = vadd.f32 %v1118_v20, %v1112_v19  ;;  %v1140_v38 = vmul.f32 0.5, %v1134_v12 }
 0x1bb   : > { %1308 = verf.f32 %v1146_v23  ;;  %v1147_v9 = vmul.f32 0.70710677, %v1135_v24  ;;  %v1138_v22 = vadd.f32 %v1132_v8, %v1125_v25  ;;  %v1126_v32 = vadd.f32 %v1120_v29, %v1114_v28 }
 0x1bc   : > { %v1148_v30 = vmul.f32 0.70710677, %v1136_v26  ;;  %v1137_v31 = vadd.f32 %v1132_v8, %v1124_v27  ;;  %v1141_v43 = vmul.f32 0.5, %v1135_v24  ;;  %v1142_v46 = vmul.f32 0.5, %v1136_v26 }
 0x1bd   : > { %1310 = verf.f32 %v1147_v9  ;;  %v1150_v33 = vmul.f32 0.70710677, %v1138_v22  ;;  %v1139_v35 = vadd.f32 %v1132_v8, %v1126_v32  ;;  %v1144_v50 = vmul.f32 0.5, %v1138_v22 }
 0x1be   : > { %1312 = verf.f32 %v1148_v30  ;;  %v1149_v34 = vmul.f32 0.70710677, %v1137_v31  ;;  %v1143_v53 = vmul.f32 0.5, %v1137_v31 }
 0x1bf   : > { %1314 = verf.f32 %v1150_v33  ;;  %v1151_v36 = vmul.f32 0.70710677, %v1139_v35  ;;  %v1145_v58 = vmul.f32 0.5, %v1139_v35 }
 0x1c0   : > { %1316 = verf.f32 %v1149_v34 }
 0x1c1   : > { %1318 = verf.f32 %v1151_v36 }
 0x1c8   : > { %v1309_v37 = vpop.eup %1308 }
 0x1c9   : > { %v1158_v39 = vadd.f32 1.0, %v1309_v37 }
 0x1ca   : > { %v1311_v40 = vpop.eup %1310 }
 0x1cb   : > { %v1313_v41 = vpop.eup %1312  ;;  %v1164_v42 = vmul.f32 %v1158_v39, %v1140_v38  ;;  %v1159_v44 = vadd.f32 1.0, %v1311_v40 }
 0x1cc   : > { %v1315_v45 = vpop.eup %1314  ;;  %v1160_v47 = vadd.f32 1.0, %v1313_v41 }
 0x1cd   : > { %v1317_v48 = vpop.eup %1316  ;;  %1170 = vst [vmem:[%s264_s24] sm:$0xff] %v1164_v42  ;;  %v1165_v49 = vmul.f32 %v1159_v44, %v1141_v43  ;;  %v1162_v51 = vadd.f32 1.0, %v1315_v45 }
 0x1ce   : > { %v1166_v52 = vmul.f32 %v1160_v47, %v1142_v46  ;;  %v1161_v54 = vadd.f32 1.0, %v1317_v48  ;;  %v1319_v55 = vpop.eup %1318 }
 0x1cf   : > { %1171 = vst [vmem:[%s264_s24 + $0x8] sm:$0xff] %v1165_v49  ;;  %v1168_v56 = vmul.f32 %v1162_v51, %v1144_v50  ;;  %v1163_v59 = vadd.f32 1.0, %v1319_v55 }
 0x1d0   : > { %1172 = vst [vmem:[%s264_s24 + $0x10] sm:$0xff] %v1166_v52  ;;  %v1167_v57 = vmul.f32 %v1161_v54, %v1143_v53 }
 0x1d1   : > { %1174 = vst [vmem:[%s264_s24 + $0x20] sm:$0xff] %v1168_v56  ;;  %v1169_v60 = vmul.f32 %v1163_v59, %v1145_v58 }
 0x1d2   : > { %1173 = vst [vmem:[%s264_s24 + $0x18] sm:$0xff] %v1167_v57 }
 0x1d3   : > { %1175 = vst [vmem:[%s264_s24 + $0x28] sm:$0xff] %v1169_v60 }
 0x1d4 PF: > { %s15_s18 = sadd.s32 1, %s1326_s18  }
 0x1d5   : > { %p12_p4 = scmp.ge.s32.totalorder %s15_s18, 4  }
 0x1d7   :  { %14 = sbr.rel (!%p12_p4) target bundleno = 1 (0x1), region = 81 }

</bundles_post_ra>
